<compile_context>
chip_gen: v7x
topology: tpu7x:2x2x1
jax: 0.10.0
libtpu: 0.0.40
codegen_flags: <defaults>
</compile_context>

<pallas_src>
import functools

import jax
import jax.numpy as jnp
import numpy as np
from jax.experimental import pallas as pl
from jax.experimental.pallas import tpu as pltpu

LANE = 128
VMEM_LIMIT = 64 * 1024 * 1024
FUSE_MAX_NODES = 1024      # single-tile fused path when n_pad <= this


def _round_up(x, m):
    return ((x + m - 1) // m) * m


def _pad2(a, rows, cols):
    out = jnp.zeros((rows, cols), a.dtype)
    return out.at[: a.shape[0], : a.shape[1]].set(a)


def _layernorm_masked(h, h_real, ln_g, ln_b):
    # LayerNorm over the *real* hidden features only (cols >= h_real are the
    # zero lane-padding; gamma/beta are zero there so they stay zero).
    lane_ids = jax.lax.broadcasted_iota(jnp.int32, (1, h.shape[-1]), 1)
    mask = lane_ids < h_real
    inv_n = 1.0 / h_real
    mean = jnp.sum(h, axis=-1, keepdims=True) * inv_n
    cent = jnp.where(mask, h - mean, 0.0)
    var = jnp.sum(cent * cent, axis=-1, keepdims=True) * inv_n
    h = cent * jax.lax.rsqrt(var + 1e-5)
    return h * ln_g + ln_b


# ---------------------------------------------------------------------------
# Fused single-tile kernel (small graphs): the entire forward pass in one
# pallas_call.  All operands live in VMEM; matmuls feed the MXU with bf16
# inputs and f32 accumulation; pointwise math stays in f32.
# ---------------------------------------------------------------------------
def fused_small_kernel(h_real, x_ref, a_ref, pool_ref,
                       enc_w_ref, enc_b_ref, ln_g_ref, ln_b_ref,
                       c1_w_ref, c1_b_ref, c2_w_ref, c2_b_ref,
                       w1_ref, b1_ref, w2_ref, b2_ref, out_ref):
    f32, bf16 = jnp.float32, jnp.bfloat16

    # node encoder: Linear -> ReLU -> LayerNorm
    h = jnp.dot(x_ref[...], enc_w_ref[...], preferred_element_type=f32)
    h = jnp.maximum(h + enc_b_ref[...], 0.0)
    h = _layernorm_masked(h, h_real, ln_g_ref[...], ln_b_ref[...])

    a = a_ref[...]
    # GCN layer 1: relu(A_hat @ (h @ Wc1) + b1)     (dropout = identity, eval)
    hw1 = jnp.dot(h.astype(bf16), c1_w_ref[...], preferred_element_type=f32)
    h1 = jnp.maximum(
        jnp.dot(a, hw1.astype(bf16), preferred_element_type=f32)
        + c1_b_ref[...], 0.0)
    # GCN layer 2
    hw2 = jnp.dot(h1.astype(bf16), c2_w_ref[...], preferred_element_type=f32)
    h2 = jnp.maximum(
        jnp.dot(a, hw2.astype(bf16), preferred_element_type=f32)
        + c2_b_ref[...], 0.0)

    # global_mean_pool + regression head
    g = jnp.dot(pool_ref[...], h2, preferred_element_type=f32)
    g = jnp.maximum(
        jnp.dot(g.astype(bf16), w1_ref[...], preferred_element_type=f32)
        + b1_ref[...], 0.0)
    out_ref[...] = jnp.dot(g.astype(bf16), w2_ref[...],
                           preferred_element_type=f32) + b2_ref[...]


# ---------------------------------------------------------------------------
# Kernel 1 (pipeline path): node encoder (Linear -> ReLU -> LayerNorm) fused
# with the first GCN feature transform:  hw1 = LN(relu(x @ We + be)) @ Wc1.
# Row-tiled over nodes ("parallel").
# ---------------------------------------------------------------------------
def encoder_kernel(h_real, x_ref, enc_w_ref, enc_b_ref, ln_g_ref, ln_b_ref,
                   c1_w_ref, hw1_ref):
    f32 = jnp.float32
    h = jnp.dot(x_ref[...], enc_w_ref[...], preferred_element_type=f32)
    h = jnp.maximum(h + enc_b_ref[...], 0.0)
    h = _layernorm_masked(h, h_real, ln_g_ref[...], ln_b_ref[...])
    hw1_ref[...] = jnp.dot(h.astype(jnp.bfloat16), c1_w_ref[...],
                           preferred_element_type=f32).astype(jnp.bfloat16)


# ---------------------------------------------------------------------------
# Kernel 2 (pipeline path): h1 = relu(A_hat @ hw1 + b1) fused with the second
# GCN feature transform hw2 = h1 @ Wc2.  Grid (row tiles "parallel",
# contraction tiles "arbitrary"); f32 accumulator in VMEM scratch.
# ---------------------------------------------------------------------------
def prop1_kernel(a_ref, hw1_ref, c1_b_ref, c2_w_ref, hw2_ref, acc_ref):
    f32 = jnp.float32
    k = pl.program_id(1)

    @pl.when(k == 0)
    def _():
        acc_ref[...] = jnp.zeros_like(acc_ref)

    acc_ref[...] += jnp.dot(a_ref[...], hw1_ref[...],
                            preferred_element_type=f32)

    @pl.when(k == pl.num_programs(1) - 1)
    def _():
        h = jnp.maximum(acc_ref[...] + c1_b_ref[...], 0.0)
        hw2_ref[...] = jnp.dot(h.astype(jnp.bfloat16), c2_w_ref[...],
                               preferred_element_type=f32).astype(jnp.bfloat16)


# ---------------------------------------------------------------------------
# Kernel 3 (pipeline path): h2 = relu(A_hat @ hw2 + b2), fused
# global_mean_pool (P @ h2 accumulated per row tile into a [G, H] scratch)
# and the regression head.  Both grid axes reduce into the pooled
# accumulator -> both "arbitrary".
# ---------------------------------------------------------------------------
def prop2_pool_head_kernel(a_ref, hw2_ref, pool_ref, c2_b_ref,
                           w1_ref, b1_ref, w2_ref, b2_ref,
                           out_ref, acc_ref, pooled_ref):
    f32 = jnp.float32
    i = pl.program_id(0)
    k = pl.program_id(1)
    last_i = pl.num_programs(0) - 1
    last_k = pl.num_programs(1) - 1

    @pl.when(jnp.logical_and(i == 0, k == 0))
    def _():
        pooled_ref[...] = jnp.zeros_like(pooled_ref)

    @pl.when(k == 0)
    def _():
        acc_ref[...] = jnp.zeros_like(acc_ref)

    acc_ref[...] += jnp.dot(a_ref[...], hw2_ref[...],
                            preferred_element_type=f32)

    @pl.when(k == last_k)
    def _():
        h = jnp.maximum(acc_ref[...] + c2_b_ref[...], 0.0)
        # fused global_mean_pool: pooled += P[:, row-tile] @ h_tile
        pooled_ref[...] += jnp.dot(pool_ref[...], h,
                                   preferred_element_type=f32)

    @pl.when(jnp.logical_and(i == last_i, k == last_k))
    def _():
        g = jnp.maximum(
            jnp.dot(pooled_ref[...].astype(jnp.bfloat16), w1_ref[...],
                    preferred_element_type=f32) + b1_ref[...], 0.0)
        out_ref[...] = jnp.dot(g.astype(jnp.bfloat16), w2_ref[...],
                               preferred_element_type=f32) + b2_ref[...]


# ---------------------------------------------------------------------------
# Graph structure -> dense normalized adjacency + mean-pool matrix (padded).
# ---------------------------------------------------------------------------
def build_graph_mats(edge_index, batch, num_nodes, n_pad, g_pad):
    src, dst = edge_index[0], edge_index[1]
    adj = jnp.zeros((n_pad, n_pad), jnp.float32)
    adj = adj.at[dst, src].set(1.0)               # row = receiving node
    self_loops = (jnp.arange(n_pad) < num_nodes).astype(jnp.float32)
    adj = adj + jnp.diag(self_loops)              # self loops on real nodes
    deg = jnp.sum(adj, axis=1)
    d_inv_sqrt = jnp.where(deg > 0, jax.lax.rsqrt(deg), 0.0)
    a_hat = d_inv_sqrt[:, None] * adj * d_inv_sqrt[None, :]

    batch_p = jnp.full((n_pad,), -1, jnp.int32).at[:num_nodes].set(batch)
    one_hot = (batch_p[None, :] ==
               jnp.arange(g_pad, dtype=jnp.int32)[:, None]).astype(jnp.float32)
    counts = jnp.maximum(jnp.sum(one_hot, axis=1, keepdims=True), 1.0)
    pool = one_hot / counts                       # [g_pad, n_pad]
    return a_hat, pool


# ---------------------------------------------------------------------------
# Forward wrapper: pad to lane-dense shapes, cast MXU operands to bf16, pick
# the fused single-tile kernel for small graphs or the 3-kernel pipeline
# otherwise, slice the real output back out.
# ---------------------------------------------------------------------------
def gnn_forward(x, edge_index, batch, params, num_graphs, force_pipeline=False):
    f32, bf16 = jnp.float32, jnp.bfloat16
    n, input_dim = x.shape
    hidden_dim = params["enc_W"].shape[1]
    output_dim = params["W2"].shape[1]

    in_pad = _round_up(input_dim, LANE)
    h_pad = _round_up(hidden_dim, LANE)
    out_pad = _round_up(output_dim, LANE)
    g_pad = _round_up(num_graphs, 8)

    # Row / contraction tiles (same size so n_pad divides both).
    tm = min(512, _round_up(n, LANE))
    tk = tm
    n_pad = _round_up(n, tm)
    n_i, n_k = n_pad // tm, n_pad // tk

    a_hat, pool = build_graph_mats(edge_index, batch, n, n_pad, g_pad)
    a_hat = a_hat.astype(bf16)

    x_p = _pad2(x, n_pad, in_pad).astype(bf16)
    enc_W = _pad2(params["enc_W"], in_pad, h_pad).astype(bf16)
    enc_b = _pad2(params["enc_b"].reshape(1, -1), 1, h_pad).astype(f32)
    ln_g = _pad2(params["ln_g"].reshape(1, -1), 1, h_pad).astype(f32)
    ln_b = _pad2(params["ln_b"].reshape(1, -1), 1, h_pad).astype(f32)
    c1_W = _pad2(params["c1_W"], h_pad, h_pad).astype(bf16)
    c1_b = _pad2(params["c1_b"].reshape(1, -1), 1, h_pad).astype(f32)
    c2_W = _pad2(params["c2_W"], h_pad, h_pad).astype(bf16)
    c2_b = _pad2(params["c2_b"].reshape(1, -1), 1, h_pad).astype(f32)
    W1 = _pad2(params["W1"], h_pad, h_pad).astype(bf16)
    b1 = _pad2(params["b1"].reshape(1, -1), 1, h_pad).astype(f32)
    W2 = _pad2(params["W2"], h_pad, out_pad).astype(bf16)
    b2 = _pad2(params["b2"].reshape(1, -1), 1, out_pad).astype(f32)

    # ---------------- fused single-tile fast path ----------------
    if n_pad <= FUSE_MAX_NODES and not force_pipeline:
        full = lambda shape: pl.BlockSpec(shape, lambda i: (0,) * len(shape))
        flops = (2 * n_pad * (in_pad + 3 * h_pad) * h_pad
                 + 2 * n_pad * n_pad * h_pad * 2
                 + 2 * g_pad * (n_pad + h_pad) * h_pad
                 + 2 * g_pad * h_pad * out_pad)
        bytes_acc = (n_pad * (in_pad + n_pad) * 2
                     + (in_pad * h_pad + 3 * h_pad * h_pad
                        + h_pad * out_pad) * 2
                     + g_pad * n_pad * 4 + g_pad * out_pad * 4)
        out_padded = pl.pallas_call(
            functools.partial(fused_small_kernel, hidden_dim),
            out_shape=jax.ShapeDtypeStruct((g_pad, out_pad), f32),
            grid=(1,),
            in_specs=[
                full((n_pad, in_pad)),      # x
                full((n_pad, n_pad)),       # A_hat
                full((g_pad, n_pad)),       # pool
                full((in_pad, h_pad)),      # enc_W
                full((1, h_pad)),           # enc_b
                full((1, h_pad)),           # ln_g
                full((1, h_pad)),           # ln_b
                full((h_pad, h_pad)),       # c1_W
                full((1, h_pad)),           # c1_b
                full((h_pad, h_pad)),       # c2_W
                full((1, h_pad)),           # c2_b
                full((h_pad, h_pad)),       # W1
                full((1, h_pad)),           # b1
                full((h_pad, out_pad)),     # W2
                full((1, out_pad)),         # b2
            ],
            out_specs=full((g_pad, out_pad)),
            compiler_params=pltpu.CompilerParams(
                dimension_semantics=("arbitrary",),
                vmem_limit_bytes=VMEM_LIMIT),
            cost_estimate=pl.CostEstimate(flops=flops, transcendentals=0,
                                          bytes_accessed=bytes_acc),
        )(x_p, a_hat, pool, enc_W, enc_b, ln_g, ln_b,
          c1_W, c1_b, c2_W, c2_b, W1, b1, W2, b2)
        return out_padded[:num_graphs, :output_dim]

    # ---------------- 3-kernel pipeline path (large graphs) ----------------
    # kernel 1: encoder + h @ Wc1
    hw1 = pl.pallas_call(
        functools.partial(encoder_kernel, hidden_dim),
        out_shape=jax.ShapeDtypeStruct((n_pad, h_pad), bf16),
        grid=(n_i,),
        in_specs=[
            pl.BlockSpec((tm, in_pad), lambda i: (i, 0)),
            pl.BlockSpec((in_pad, h_pad), lambda i: (0, 0)),
            pl.BlockSpec((1, h_pad), lambda i: (0, 0)),
            pl.BlockSpec((1, h_pad), lambda i: (0, 0)),
            pl.BlockSpec((1, h_pad), lambda i: (0, 0)),
            pl.BlockSpec((h_pad, h_pad), lambda i: (0, 0)),
        ],
        out_specs=pl.BlockSpec((tm, h_pad), lambda i: (i, 0)),
        compiler_params=pltpu.CompilerParams(
            dimension_semantics=("parallel",),
            vmem_limit_bytes=VMEM_LIMIT),
    )(x_p, enc_W, enc_b, ln_g, ln_b, c1_W)

    # kernel 2: A_hat @ hw1 -> relu -> @ Wc2
    flops2 = 2 * n_pad * n_pad * h_pad + 2 * n_pad * h_pad * h_pad
    bytes2 = (n_pad * n_pad + 2 * n_pad * h_pad + h_pad * h_pad) * 2 + h_pad * 4
    hw2 = pl.pallas_call(
        prop1_kernel,
        out_shape=jax.ShapeDtypeStruct((n_pad, h_pad), bf16),
        grid=(n_i, n_k),
        in_specs=[
            pl.BlockSpec((tm, tk), lambda i, k: (i, k)),
            pl.BlockSpec((tk, h_pad), lambda i, k: (k, 0)),
            pl.BlockSpec((1, h_pad), lambda i, k: (0, 0)),
            pl.BlockSpec((h_pad, h_pad), lambda i, k: (0, 0)),
        ],
        out_specs=pl.BlockSpec((tm, h_pad), lambda i, k: (i, 0)),
        scratch_shapes=[pltpu.VMEM((tm, h_pad), f32)],
        compiler_params=pltpu.CompilerParams(
            dimension_semantics=("parallel", "arbitrary"),
            vmem_limit_bytes=VMEM_LIMIT),
        cost_estimate=pl.CostEstimate(flops=flops2, transcendentals=0,
                                      bytes_accessed=bytes2),
    )(a_hat, hw1, c1_b, c2_W)

    # kernel 3: A_hat @ hw2 -> relu -> fused mean-pool + MLP head
    flops3 = (2 * n_pad * n_pad * h_pad + 2 * g_pad * n_pad * h_pad
              + 2 * g_pad * h_pad * h_pad + 2 * g_pad * h_pad * out_pad)
    bytes3 = ((n_pad * n_pad + n_pad * h_pad + h_pad * h_pad
               + h_pad * out_pad) * 2
              + g_pad * n_pad * 4 + g_pad * out_pad * 4)
    out_padded = pl.pallas_call(
        prop2_pool_head_kernel,
        out_shape=jax.ShapeDtypeStruct((g_pad, out_pad), f32),
        grid=(n_i, n_k),
        in_specs=[
            pl.BlockSpec((tm, tk), lambda i, k: (i, k)),
            pl.BlockSpec((tk, h_pad), lambda i, k: (k, 0)),
            pl.BlockSpec((g_pad, tm), lambda i, k: (0, i)),
            pl.BlockSpec((1, h_pad), lambda i, k: (0, 0)),
            pl.BlockSpec((h_pad, h_pad), lambda i, k: (0, 0)),
            pl.BlockSpec((1, h_pad), lambda i, k: (0, 0)),
            pl.BlockSpec((h_pad, out_pad), lambda i, k: (0, 0)),
            pl.BlockSpec((1, out_pad), lambda i, k: (0, 0)),
        ],
        out_specs=pl.BlockSpec((g_pad, out_pad), lambda i, k: (0, 0)),
        scratch_shapes=[pltpu.VMEM((tm, h_pad), f32),
                        pltpu.VMEM((g_pad, h_pad), f32)],
        compiler_params=pltpu.CompilerParams(
            dimension_semantics=("arbitrary", "arbitrary"),
            vmem_limit_bytes=VMEM_LIMIT),
        cost_estimate=pl.CostEstimate(flops=flops3, transcendentals=0,
                                      bytes_accessed=bytes3),
    )(a_hat, hw2, pool, c2_b, W1, b1, W2, b2)

    return out_padded[:num_graphs, :output_dim]


# ---------------------------------------------------------------------------
# Pure-JAX f32 reference (same math, unpadded) for a sanity check.
# ---------------------------------------------------------------------------
def gnn_reference(x, edge_index, batch, params, num_graphs):
    n = x.shape[0]
    src, dst = edge_index[0], edge_index[1]
    adj = jnp.zeros((n, n), jnp.float32).at[dst, src].set(1.0) + jnp.eye(n)
    deg = adj.sum(1)
    dis = jnp.where(deg > 0, 1.0 / jnp.sqrt(deg), 0.0)
    a_hat = dis[:, None] * adj * dis[None, :]
    one_hot = (batch[None, :] ==
               jnp.arange(num_graphs)[:, None]).astype(jnp.float32)
    pool = one_hot / jnp.maximum(one_hot.sum(1, keepdims=True), 1.0)

    h = jnp.maximum(x @ params["enc_W"] + params["enc_b"], 0.0)
    mean = h.mean(-1, keepdims=True)
    var = ((h - mean) ** 2).mean(-1, keepdims=True)
    h = (h - mean) / jnp.sqrt(var + 1e-5) * params["ln_g"] + params["ln_b"]
    h = jnp.maximum(a_hat @ (h @ params["c1_W"]) + params["c1_b"], 0.0)
    h = jnp.maximum(a_hat @ (h @ params["c2_W"]) + params["c2_b"], 0.0)
    g = pool @ h
    g = jnp.maximum(g @ params["W1"] + params["b1"], 0.0)
    return g @ params["W2"] + params["b2"]


def init_params(key, input_dim, hidden_dim, output_dim):
    ks = jax.random.split(key, 10)
    s = 0.1
    return {
        "enc_W": s * jax.random.normal(ks[0], (input_dim, hidden_dim), jnp.float32),
        "enc_b": s * jax.random.normal(ks[1], (hidden_dim,), jnp.float32),
        "ln_g": jnp.ones((hidden_dim,), jnp.float32),
        "ln_b": jnp.zeros((hidden_dim,), jnp.float32),
        "c1_W": s * jax.random.normal(ks[2], (hidden_dim, hidden_dim), jnp.float32),
        "c1_b": s * jax.random.normal(ks[3], (hidden_dim,), jnp.float32),
        "c2_W": s * jax.random.normal(ks[4], (hidden_dim, hidden_dim), jnp.float32),
        "c2_b": s * jax.random.normal(ks[5], (hidden_dim,), jnp.float32),
        "W1": s * jax.random.normal(ks[6], (hidden_dim, hidden_dim), jnp.float32),
        "b1": s * jax.random.normal(ks[7], (hidden_dim,), jnp.float32),
        "W2": s * jax.random.normal(ks[8], (hidden_dim, output_dim), jnp.float32),
        "b2": s * jax.random.normal(ks[9], (output_dim,), jnp.float32),
    }


if __name__ == "__main__":
    hidden_dim = 48       # matches the PyTorch spec
    input_dim = 9         # molecule.num_node_features (synthetic)
    output_dim = 1
    num_graphs = 2
    nodes_per_graph = 8
    num_nodes = num_graphs * nodes_per_graph

    key = jax.random.PRNGKey(0)
    k_x, k_p = jax.random.split(key)
    x = jax.random.normal(k_x, (num_nodes, input_dim), jnp.float32)

    # chain within each graph, both directions (undirected molecule-like graph)
    src, dst = [], []
    for g in range(num_graphs):
        base = g * nodes_per_graph
        for i in range(nodes_per_graph - 1):
            src += [base + i, base + i + 1]
            dst += [base + i + 1, base + i]
    edge_index = jnp.array([src, dst], dtype=jnp.int32)
    batch = jnp.repeat(jnp.arange(num_graphs, dtype=jnp.int32), nodes_per_graph)

    params = init_params(k_p, input_dim, hidden_dim, output_dim)
    ref = gnn_reference(x, edge_index, batch, params, num_graphs)

    # Fused single-kernel fast path (used for small graphs like this one).
    out = gnn_forward(x, edge_index, batch, params, num_graphs)
    out = jax.block_until_ready(out)
    assert out.shape == (num_graphs, output_dim)
    np.testing.assert_allclose(np.asarray(out), np.asarray(ref),
                               rtol=5e-2, atol=5e-2)

    # Also exercise the scalable 3-kernel pipeline path.
    out_pipe = gnn_forward(x, edge_index, batch, params, num_graphs,
                           force_pipeline=True)
    out_pipe = jax.block_until_ready(out_pipe)
    np.testing.assert_allclose(np.asarray(out_pipe), np.asarray(ref),
                               rtol=5e-2, atol=5e-2)

    print("KERNEL_OK")
</pallas_src>

<mosaic_0001>
module attributes {stable_mosaic.version = 11 : i64} {
  func.func @fused_small_kernel(%arg0: i32, %arg1: memref<128x128xbf16, #tpu.memory_space<vmem>>, %arg2: memref<128x128xbf16, #tpu.memory_space<vmem>>, %arg3: memref<8x128xf32, #tpu.memory_space<vmem>>, %arg4: memref<128x128xbf16, #tpu.memory_space<vmem>>, %arg5: memref<1x128xf32, #tpu.memory_space<vmem>>, %arg6: memref<1x128xf32, #tpu.memory_space<vmem>>, %arg7: memref<1x128xf32, #tpu.memory_space<vmem>>, %arg8: memref<128x128xbf16, #tpu.memory_space<vmem>>, %arg9: memref<1x128xf32, #tpu.memory_space<vmem>>, %arg10: memref<128x128xbf16, #tpu.memory_space<vmem>>, %arg11: memref<1x128xf32, #tpu.memory_space<vmem>>, %arg12: memref<128x128xbf16, #tpu.memory_space<vmem>>, %arg13: memref<1x128xf32, #tpu.memory_space<vmem>>, %arg14: memref<128x128xbf16, #tpu.memory_space<vmem>>, %arg15: memref<1x128xf32, #tpu.memory_space<vmem>>, %arg16: memref<8x128xf32, #tpu.memory_space<vmem>>) attributes {dimension_semantics = [#tpu.dimension_semantics<arbitrary>], iteration_bounds = array<i64: 1>, scalar_prefetch = 0 : i64, scratch_operands = 0 : i64, tpu.core_type = #tpu.core_type<tc>, window_params = [{pipeline_mode = #tpu.pipeline_mode<synchronous>, transform_indices = @transform_0, window_bounds = array<i64: 128, 128>}, {pipeline_mode = #tpu.pipeline_mode<synchronous>, transform_indices = @transform_1, window_bounds = array<i64: 128, 128>}, {pipeline_mode = #tpu.pipeline_mode<synchronous>, transform_indices = @transform_2, window_bounds = array<i64: 8, 128>}, {pipeline_mode = #tpu.pipeline_mode<synchronous>, transform_indices = @transform_3, window_bounds = array<i64: 128, 128>}, {pipeline_mode = #tpu.pipeline_mode<synchronous>, transform_indices = @transform_4, window_bounds = array<i64: 1, 128>}, {pipeline_mode = #tpu.pipeline_mode<synchronous>, transform_indices = @transform_5, window_bounds = array<i64: 1, 128>}, {pipeline_mode = #tpu.pipeline_mode<synchronous>, transform_indices = @transform_6, window_bounds = array<i64: 1, 128>}, {pipeline_mode = #tpu.pipeline_mode<synchronous>, transform_indices = @transform_7, window_bounds = array<i64: 128, 128>}, {pipeline_mode = #tpu.pipeline_mode<synchronous>, transform_indices = @transform_8, window_bounds = array<i64: 1, 128>}, {pipeline_mode = #tpu.pipeline_mode<synchronous>, transform_indices = @transform_9, window_bounds = array<i64: 128, 128>}, {pipeline_mode = #tpu.pipeline_mode<synchronous>, transform_indices = @transform_10, window_bounds = array<i64: 1, 128>}, {pipeline_mode = #tpu.pipeline_mode<synchronous>, transform_indices = @transform_11, window_bounds = array<i64: 128, 128>}, {pipeline_mode = #tpu.pipeline_mode<synchronous>, transform_indices = @transform_12, window_bounds = array<i64: 1, 128>}, {pipeline_mode = #tpu.pipeline_mode<synchronous>, transform_indices = @transform_13, window_bounds = array<i64: 128, 128>}, {pipeline_mode = #tpu.pipeline_mode<synchronous>, transform_indices = @transform_14, window_bounds = array<i64: 1, 128>}, {pipeline_mode = #tpu.pipeline_mode<synchronous>, transform_indices = @transform_15, window_bounds = array<i64: 8, 128>}]} {
    %c0 = arith.constant 0 : index
    %c0_0 = arith.constant 0 : index
    %0 = vector.load %arg1[%c0, %c0_0] : memref<128x128xbf16, #tpu.memory_space<vmem>>, vector<128x128xbf16>
    %c0_1 = arith.constant 0 : index
    %c0_2 = arith.constant 0 : index
    %1 = vector.load %arg4[%c0_1, %c0_2] : memref<128x128xbf16, #tpu.memory_space<vmem>>, vector<128x128xbf16>
    %cst = arith.constant dense<0.000000e+00> : vector<128x128xf32>
    %2 = tpu.matmul %0, %1, %cst {dimension_numbers = #tpu.dot_dimension_numbers<[1], [0], [0], [1], [0, 0, 1, 1], [], []>} : vector<128x128xbf16>, vector<128x128xbf16>, vector<128x128xf32> -> vector<128x128xf32>
    %c0_3 = arith.constant 0 : index
    %c0_4 = arith.constant 0 : index
    %3 = vector.load %arg5[%c0_3, %c0_4] : memref<1x128xf32, #tpu.memory_space<vmem>>, vector<1x128xf32>
    %4 = vector.broadcast %3 : vector<1x128xf32> to vector<128x128xf32>
    %5 = arith.addf %2, %4 : vector<128x128xf32>
    %cst_5 = arith.constant 0.000000e+00 : f32
    %6 = vector.broadcast %cst_5 : f32 to vector<128x128xf32>
    %7 = arith.maximumf %5, %6 : vector<128x128xf32>
    %c0_6 = arith.constant 0 : index
    %c0_7 = arith.constant 0 : index
    %8 = vector.load %arg6[%c0_6, %c0_7] : memref<1x128xf32, #tpu.memory_space<vmem>>, vector<1x128xf32>
    %c0_8 = arith.constant 0 : index
    %c0_9 = arith.constant 0 : index
    %9 = vector.load %arg7[%c0_8, %c0_9] : memref<1x128xf32, #tpu.memory_space<vmem>>, vector<1x128xf32>
    %10 = tpu.iota {dimensions = array<i32: 1>} : vector<1x128xi32>
    %c48_i32 = arith.constant 48 : i32
    %11 = vector.broadcast %c48_i32 : i32 to vector<1x128xi32>
    %12 = arith.cmpi slt, %10, %11 : vector<1x128xi32>
    %cst_10 = arith.constant dense<0.000000e+00> : vector<128xf32>
    %13 = vector.multi_reduction <add>, %7, %cst_10 [1] : vector<128x128xf32> to vector<128xf32>
    %14 = vector.shape_cast %13 : vector<128xf32> to vector<128x1xf32>
    %cst_11 = arith.constant 0.020833334 : f32
    %15 = vector.broadcast %cst_11 : f32 to vector<128x1xf32>
    %16 = arith.mulf %14, %15 : vector<128x1xf32>
    %17 = vector.broadcast %16 : vector<128x1xf32> to vector<128x128xf32>
    %18 = arith.subf %7, %17 : vector<128x128xf32>
    %cst_12 = arith.constant 0.000000e+00 : f32
    %19 = vector.shape_cast %12 : vector<1x128xi1> to vector<1x128xi1>
    %20 = vector.broadcast %19 : vector<1x128xi1> to vector<128x128xi1>
    %21 = vector.broadcast %cst_12 : f32 to vector<128x128xf32>
    %22 = arith.select %20, %18, %21 : vector<128x128xi1>, vector<128x128xf32>
    %23 = arith.mulf %22, %22 : vector<128x128xf32>
    %cst_13 = arith.constant dense<0.000000e+00> : vector<128xf32>
    %24 = vector.multi_reduction <add>, %23, %cst_13 [1] : vector<128x128xf32> to vector<128xf32>
    %25 = vector.shape_cast %24 : vector<128xf32> to vector<128x1xf32>
    %cst_14 = arith.constant 0.020833334 : f32
    %26 = vector.broadcast %cst_14 : f32 to vector<128x1xf32>
    %27 = arith.mulf %25, %26 : vector<128x1xf32>
    %cst_15 = arith.constant 9.99999974E-6 : f32
    %28 = vector.broadcast %cst_15 : f32 to vector<128x1xf32>
    %29 = arith.addf %27, %28 : vector<128x1xf32>
    %30 = math.rsqrt %29 : vector<128x1xf32>
    %31 = vector.broadcast %30 : vector<128x1xf32> to vector<128x128xf32>
    %32 = arith.mulf %22, %31 : vector<128x128xf32>
    %33 = vector.broadcast %8 : vector<1x128xf32> to vector<128x128xf32>
    %34 = arith.mulf %32, %33 : vector<128x128xf32>
    %35 = vector.broadcast %9 : vector<1x128xf32> to vector<128x128xf32>
    %36 = arith.addf %34, %35 : vector<128x128xf32>
    %c0_16 = arith.constant 0 : index
    %c0_17 = arith.constant 0 : index
    %37 = vector.load %arg2[%c0_16, %c0_17] : memref<128x128xbf16, #tpu.memory_space<vmem>>, vector<128x128xbf16>
    %38 = arith.truncf %36 : vector<128x128xf32> to vector<128x128xbf16>
    %c0_18 = arith.constant 0 : index
    %c0_19 = arith.constant 0 : index
    %39 = vector.load %arg8[%c0_18, %c0_19] : memref<128x128xbf16, #tpu.memory_space<vmem>>, vector<128x128xbf16>
    %cst_20 = arith.constant dense<0.000000e+00> : vector<128x128xf32>
    %40 = tpu.matmul %38, %39, %cst_20 {dimension_numbers = #tpu.dot_dimension_numbers<[1], [0], [0], [1], [0, 0, 1, 1], [], []>} : vector<128x128xbf16>, vector<128x128xbf16>, vector<128x128xf32> -> vector<128x128xf32>
    %41 = arith.truncf %40 : vector<128x128xf32> to vector<128x128xbf16>
    %cst_21 = arith.constant dense<0.000000e+00> : vector<128x128xf32>
    %42 = tpu.matmul %37, %41, %cst_21 {dimension_numbers = #tpu.dot_dimension_numbers<[1], [0], [0], [1], [0, 0, 1, 1], [], []>} : vector<128x128xbf16>, vector<128x128xbf16>, vector<128x128xf32> -> vector<128x128xf32>
    %c0_22 = arith.constant 0 : index
    %c0_23 = arith.constant 0 : index
    %43 = vector.load %arg9[%c0_22, %c0_23] : memref<1x128xf32, #tpu.memory_space<vmem>>, vector<1x128xf32>
    %44 = vector.broadcast %43 : vector<1x128xf32> to vector<128x128xf32>
    %45 = arith.addf %42, %44 : vector<128x128xf32>
    %cst_24 = arith.constant 0.000000e+00 : f32
    %46 = vector.broadcast %cst_24 : f32 to vector<128x128xf32>
    %47 = arith.maximumf %45, %46 : vector<128x128xf32>
    %48 = arith.truncf %47 : vector<128x128xf32> to vector<128x128xbf16>
    %c0_25 = arith.constant 0 : index
    %c0_26 = arith.constant 0 : index
    %49 = vector.load %arg10[%c0_25, %c0_26] : memref<128x128xbf16, #tpu.memory_space<vmem>>, vector<128x128xbf16>
    %cst_27 = arith.constant dense<0.000000e+00> : vector<128x128xf32>
    %50 = tpu.matmul %48, %49, %cst_27 {dimension_numbers = #tpu.dot_dimension_numbers<[1], [0], [0], [1], [0, 0, 1, 1], [], []>} : vector<128x128xbf16>, vector<128x128xbf16>, vector<128x128xf32> -> vector<128x128xf32>
    %51 = arith.truncf %50 : vector<128x128xf32> to vector<128x128xbf16>
    %cst_28 = arith.constant dense<0.000000e+00> : vector<128x128xf32>
    %52 = tpu.matmul %37, %51, %cst_28 {dimension_numbers = #tpu.dot_dimension_numbers<[1], [0], [0], [1], [0, 0, 1, 1], [], []>} : vector<128x128xbf16>, vector<128x128xbf16>, vector<128x128xf32> -> vector<128x128xf32>
    %c0_29 = arith.constant 0 : index
    %c0_30 = arith.constant 0 : index
    %53 = vector.load %arg11[%c0_29, %c0_30] : memref<1x128xf32, #tpu.memory_space<vmem>>, vector<1x128xf32>
    %54 = vector.broadcast %53 : vector<1x128xf32> to vector<128x128xf32>
    %55 = arith.addf %52, %54 : vector<128x128xf32>
    %cst_31 = arith.constant 0.000000e+00 : f32
    %56 = vector.broadcast %cst_31 : f32 to vector<128x128xf32>
    %57 = arith.maximumf %55, %56 : vector<128x128xf32>
    %c0_32 = arith.constant 0 : index
    %c0_33 = arith.constant 0 : index
    %58 = vector.load %arg3[%c0_32, %c0_33] : memref<8x128xf32, #tpu.memory_space<vmem>>, vector<8x128xf32>
    %cst_34 = arith.constant dense<0.000000e+00> : vector<8x128xf32>
    %59 = tpu.matmul %58, %57, %cst_34 {dimension_numbers = #tpu.dot_dimension_numbers<[1], [0], [0], [1], [0, 0, 1, 1], [], []>} : vector<8x128xf32>, vector<128x128xf32>, vector<8x128xf32> -> vector<8x128xf32>
    %60 = arith.truncf %59 : vector<8x128xf32> to vector<8x128xbf16>
    %c0_35 = arith.constant 0 : index
    %c0_36 = arith.constant 0 : index
    %61 = vector.load %arg12[%c0_35, %c0_36] : memref<128x128xbf16, #tpu.memory_space<vmem>>, vector<128x128xbf16>
    %cst_37 = arith.constant dense<0.000000e+00> : vector<8x128xf32>
    %62 = tpu.matmul %60, %61, %cst_37 {dimension_numbers = #tpu.dot_dimension_numbers<[1], [0], [0], [1], [0, 0, 1, 1], [], []>} : vector<8x128xbf16>, vector<128x128xbf16>, vector<8x128xf32> -> vector<8x128xf32>
    %c0_38 = arith.constant 0 : index
    %c0_39 = arith.constant 0 : index
    %63 = vector.load %arg13[%c0_38, %c0_39] : memref<1x128xf32, #tpu.memory_space<vmem>>, vector<1x128xf32>
    %64 = vector.broadcast %63 : vector<1x128xf32> to vector<8x128xf32>
    %65 = arith.addf %62, %64 : vector<8x128xf32>
    %cst_40 = arith.constant 0.000000e+00 : f32
    %66 = vector.broadcast %cst_40 : f32 to vector<8x128xf32>
    %67 = arith.maximumf %65, %66 : vector<8x128xf32>
    %68 = arith.truncf %67 : vector<8x128xf32> to vector<8x128xbf16>
    %c0_41 = arith.constant 0 : index
    %c0_42 = arith.constant 0 : index
    %69 = vector.load %arg14[%c0_41, %c0_42] : memref<128x128xbf16, #tpu.memory_space<vmem>>, vector<128x128xbf16>
    %cst_43 = arith.constant dense<0.000000e+00> : vector<8x128xf32>
    %70 = tpu.matmul %68, %69, %cst_43 {dimension_numbers = #tpu.dot_dimension_numbers<[1], [0], [0], [1], [0, 0, 1, 1], [], []>} : vector<8x128xbf16>, vector<128x128xbf16>, vector<8x128xf32> -> vector<8x128xf32>
    %c0_44 = arith.constant 0 : index
    %c0_45 = arith.constant 0 : index
    %71 = vector.load %arg15[%c0_44, %c0_45] : memref<1x128xf32, #tpu.memory_space<vmem>>, vector<1x128xf32>
    %72 = vector.broadcast %71 : vector<1x128xf32> to vector<8x128xf32>
    %73 = arith.addf %70, %72 : vector<8x128xf32>
    %c0_46 = arith.constant 0 : index
    %c0_47 = arith.constant 0 : index
    %74 = vector.load %arg16[%c0_46, %c0_47] : memref<8x128xf32, #tpu.memory_space<vmem>>, vector<8x128xf32>
    tpu.vector_store %arg16[%c0_46, %c0_47], %73 {strides = array<i32>} : memref<8x128xf32, #tpu.memory_space<vmem>>, vector<8x128xf32>,
    return
  }
  func.func @transform_0(%arg0: i32) -> (i32, i32) {
    %c0_i32 = arith.constant 0 : i32
    %c0_i32_0 = arith.constant 0 : i32
    %c0_i32_1 = arith.constant 0 : i32
    return %c0_i32, %c0_i32_0 : i32, i32
  }
  func.func @transform_1(%arg0: i32) -> (i32, i32) {
    %c0_i32 = arith.constant 0 : i32
    %c0_i32_0 = arith.constant 0 : i32
    %c0_i32_1 = arith.constant 0 : i32
    return %c0_i32, %c0_i32_0 : i32, i32
  }
  func.func @transform_2(%arg0: i32) -> (i32, i32) {
    %c0_i32 = arith.constant 0 : i32
    %c0_i32_0 = arith.constant 0 : i32
    %c0_i32_1 = arith.constant 0 : i32
    return %c0_i32, %c0_i32_0 : i32, i32
  }
  func.func @transform_3(%arg0: i32) -> (i32, i32) {
    %c0_i32 = arith.constant 0 : i32
    %c0_i32_0 = arith.constant 0 : i32
    %c0_i32_1 = arith.constant 0 : i32
    return %c0_i32, %c0_i32_0 : i32, i32
  }
  func.func @transform_4(%arg0: i32) -> (i32, i32) {
    %c0_i32 = arith.constant 0 : i32
    %c0_i32_0 = arith.constant 0 : i32
    %c0_i32_1 = arith.constant 0 : i32
    return %c0_i32, %c0_i32_0 : i32, i32
  }
  func.func @transform_5(%arg0: i32) -> (i32, i32) {
    %c0_i32 = arith.constant 0 : i32
    %c0_i32_0 = arith.constant 0 : i32
    %c0_i32_1 = arith.constant 0 : i32
    return %c0_i32, %c0_i32_0 : i32, i32
  }
  func.func @transform_6(%arg0: i32) -> (i32, i32) {
    %c0_i32 = arith.constant 0 : i32
    %c0_i32_0 = arith.constant 0 : i32
    %c0_i32_1 = arith.constant 0 : i32
    return %c0_i32, %c0_i32_0 : i32, i32
  }
  func.func @transform_7(%arg0: i32) -> (i32, i32) {
    %c0_i32 = arith.constant 0 : i32
    %c0_i32_0 = arith.constant 0 : i32
    %c0_i32_1 = arith.constant 0 : i32
    return %c0_i32, %c0_i32_0 : i32, i32
  }
  func.func @transform_8(%arg0: i32) -> (i32, i32) {
    %c0_i32 = arith.constant 0 : i32
    %c0_i32_0 = arith.constant 0 : i32
    %c0_i32_1 = arith.constant 0 : i32
    return %c0_i32, %c0_i32_0 : i32, i32
  }
  func.func @transform_9(%arg0: i32) -> (i32, i32) {
    %c0_i32 = arith.constant 0 : i32
    %c0_i32_0 = arith.constant 0 : i32
    %c0_i32_1 = arith.constant 0 : i32
    return %c0_i32, %c0_i32_0 : i32, i32
  }
  func.func @transform_10(%arg0: i32) -> (i32, i32) {
    %c0_i32 = arith.constant 0 : i32
    %c0_i32_0 = arith.constant 0 : i32
    %c0_i32_1 = arith.constant 0 : i32
    return %c0_i32, %c0_i32_0 : i32, i32
  }
  func.func @transform_11(%arg0: i32) -> (i32, i32) {
    %c0_i32 = arith.constant 0 : i32
    %c0_i32_0 = arith.constant 0 : i32
    %c0_i32_1 = arith.constant 0 : i32
    return %c0_i32, %c0_i32_0 : i32, i32
  }
  func.func @transform_12(%arg0: i32) -> (i32, i32) {
    %c0_i32 = arith.constant 0 : i32
    %c0_i32_0 = arith.constant 0 : i32
    %c0_i32_1 = arith.constant 0 : i32
    return %c0_i32, %c0_i32_0 : i32, i32
  }
  func.func @transform_13(%arg0: i32) -> (i32, i32) {
    %c0_i32 = arith.constant 0 : i32
    %c0_i32_0 = arith.constant 0 : i32
    %c0_i32_1 = arith.constant 0 : i32
    return %c0_i32, %c0_i32_0 : i32, i32
  }
  func.func @transform_14(%arg0: i32) -> (i32, i32) {
    %c0_i32 = arith.constant 0 : i32
    %c0_i32_0 = arith.constant 0 : i32
    %c0_i32_1 = arith.constant 0 : i32
    return %c0_i32, %c0_i32_0 : i32, i32
  }
  func.func @transform_15(%arg0: i32) -> (i32, i32) {
    %c0_i32 = arith.constant 0 : i32
    %c0_i32_0 = arith.constant 0 : i32
    %c0_i32_1 = arith.constant 0 : i32
    return %c0_i32, %c0_i32_0 : i32, i32
  }
}

</mosaic_0001>

<bundles_post_ra>
// kernel: tpu_custom_call.1
= control target key start
LH: loop header
LB: loop body
LE: loop exit
PB: predicated region body
PF: predicated region fallthrough
CT: control target
= control target key end

     0   :  { %20 = vsyncpa [#allocation3], 0  ;;  %s3290_s0 = inlined_call_operand.hbm [shape: bf16[128,128], index: 0, kind: input, shape index: {}]   ;;  %s3291_s1 = inlined_call_operand.hbm [shape: bf16[128,128], index: 1, kind: input, shape index: {}]   ;;  %s3292_s2 = inlined_call_operand.hbm [shape: f32[8,128], index: 2, kind: input, shape index: {}]   ;;  %s3293_s3 = inlined_call_operand.hbm [shape: bf16[128,128], index: 3, kind: input, shape index: {}]   ;;  %s3294_s4 = inlined_call_operand.hbm [shape: f32[1,128], index: 4, kind: input, shape index: {}]   ;;  %s3295_s5 = inlined_call_operand.hbm [shape: f32[1,128], index: 5, kind: input, shape index: {}]   ;;  %s3296_s6 = inlined_call_operand.hbm [shape: f32[1,128], index: 6, kind: input, shape index: {}]   ;;  %s3297_s7 = inlined_call_operand.hbm [shape: bf16[128,128], index: 7, kind: input, shape index: {}]   ;;  %s3298_s8 = inlined_call_operand.hbm [shape: f32[1,128], index: 8, kind: input, shape index: {}]   ;;  %s3299_s9 = inlined_call_operand.hbm [shape: bf16[128,128], index: 9, kind: input, shape index: {}]   ;;  %s3300_s10 = inlined_call_operand.hbm [shape: f32[1,128], index: 10, kind: input, shape index: {}]   ;;  %s3301_s11 = inlined_call_operand.hbm [shape: bf16[128,128], index: 11, kind: input, shape index: {}]   ;;  %s3302_s12 = inlined_call_operand.hbm [shape: f32[1,128], index: 12, kind: input, shape index: {}]   ;;  %s3303_s13 = inlined_call_operand.hbm [shape: bf16[128,128], index: 13, kind: input, shape index: {}]   ;;  %s3304_s14 = inlined_call_operand.hbm [shape: f32[1,128], index: 14, kind: input, shape index: {}]   ;;  %s3305_s15 = inlined_call_operand.hbm [shape: f32[8,128], index: 15, kind: output, shape index: {}]  }
   0x1   :  { %21 = vsyncpa [#allocation6], 0 }
   0x2   :  { %22 = vsyncpa [#allocation9], 0 }
   0x3   :  { %23 = vsyncpa [#allocation12], 0 }
   0x4   :  { %24 = vsyncpa [#allocation15], 0 }
   0x5   :  { %25 = vsyncpa [#allocation18], 0 }
   0x6   :  { %26 = vsyncpa [#allocation21], 0 }
   0x7   :  { %27 = vsyncpa [#allocation24], 0 }
   0x8   :  { %28 = vsyncpa [#allocation4], 0  ;;  %s2623_s18 = smov [#allocation5]   ;;  %s2624_s20 = smov [#allocation8]  }
   0x9   :  { %s46_s19 = sshll.u32 %s2623_s18, 4  ;;  %s68_s21 = sshll.u32 %s2624_s20, 4  ;;  %s47_s19 = int_to_ptr.vmem [resolvable:$true] %s46_s19  ;;  %s2724_s21 = int_to_ptr.vmem [resolvable:$true] %s68_s21 }
   0xa   :  { %s2253_s24 = scalar_lea.hbm %s3291_s1, 1024 }
   0xb   :  { %p2254_p0 = scmp.ne.s32.totalorder %s3291_s1, %s2253_s24  ;;  %p2257_p1 = scmp.lt.u32.totalorder %s2253_s24, %s3291_s1 }
   0xd   :  { %p2259_p2 = pnand %p2257_p1, %p2254_p0 }
   0xf   :  { %2262 = shalt.err (!%p2259_p2)
}
  0x10   :  { %s2263_s29 = scalar_lea.vmem %s47_s19, 1024  ;;  %p2268_p4 = scmp.lt.s32.totalorder %s47_s19, %s47_s19 }
  0x11   :  { %p2264_p3 = scmp.ne.s32.totalorder %s47_s19, %s2263_s29  ;;  %p2269_p5 = scmp.lt.s32.totalorder %s2263_s29, %s2263_s29 }
  0x13   :  { %p2270_p6 = por %p2269_p5, %p2268_p4 }
  0x15   :  { %p2271_p7 = pnand %p2270_p6, %p2264_p3 }
  0x17   :  { %2274 = shalt.err (!%p2271_p7)
}
  0x18   :  { %s2625_s30 = smov 64   ;;  %s2626_s16 = smov 4  }
  0x19   :  { %52 = dma.hbm_to_vmem [thread:$0]  %s3291_s1, 1024, %s47_s19, [#allocation6], %s2625_s30, %s2625_s30, %s2626_s16  }
  0x1a   :  { %s2275_s23 = scalar_lea.hbm %s3293_s3, 1024 }
  0x1b   :  { %p2276_p8 = scmp.ne.s32.totalorder %s3293_s3, %s2275_s23  ;;  %p2279_p9 = scmp.lt.u32.totalorder %s2275_s23, %s3293_s3 }
  0x1d   :  { %p2281_p10 = pnand %p2279_p9, %p2276_p8 }
  0x1f   :  { %2284 = shalt.err (!%p2281_p10)
}
  0x20   :  { %s2285_s28 = scalar_lea.vmem %s2724_s21, 1024  ;;  %p2290_p12 = scmp.lt.s32.totalorder %s2724_s21, %s2724_s21 }
  0x21   :  { %p2286_p11 = scmp.ne.s32.totalorder %s2724_s21, %s2285_s28  ;;  %p2291_p13 = scmp.lt.s32.totalorder %s2285_s28, %s2285_s28 }
  0x23   :  { %p2292_p0 = por %p2291_p13, %p2290_p12 }
  0x25   :  { %p2293_p1 = pnand %p2292_p0, %p2286_p11 }
  0x27   :  { %2296 = shalt.err (!%p2293_p1)
}
  0x28   :  { %74 = dma.hbm_to_vmem [thread:$0]  %s3293_s3, 1024, %s2724_s21, [#allocation9], %s2625_s30, %s2625_s30, %s2626_s16  }
  0x29   :  { %s2627_s29 = smov [#allocation11]   ;;  %s2628_s18 = smov [#allocation14]  }
  0x2a   :  { %s91_s17 = sshll.u32 %s2627_s29, 4  ;;  %s110_s20 = sshll.u32 %s2628_s18, 4  ;;  %s92_s17 = int_to_ptr.vmem [resolvable:$true] %s91_s17  ;;  %s2761_s20 = int_to_ptr.vmem [resolvable:$true] %s110_s20 }
  0x2b   :  { %s2297_s24 = scalar_lea.hbm %s3295_s5, 16 }
  0x2c   :  { %p2298_p2 = scmp.ne.s32.totalorder %s3295_s5, %s2297_s24  ;;  %p2301_p3 = scmp.lt.u32.totalorder %s2297_s24, %s3295_s5 }
  0x2e   :  { %p2303_p4 = pnand %p2301_p3, %p2298_p2 }
  0x30   :  { %2306 = shalt.err (!%p2303_p4)
}
  0x31   :  { %s2307_s3 = scalar_lea.vmem %s92_s17, 16  ;;  %s2311_s21 = scalar_lea.vmem %s92_s17, 32 }
  0x32   :  { %p2308_p5 = scmp.ne.s32.totalorder %s92_s17, %s2307_s3  ;;  %p2312_p6 = scmp.lt.s32.totalorder %s92_s17, %s92_s17 }
  0x33   :  { %p2313_p7 = scmp.lt.s32.totalorder %s2311_s21, %s2307_s3 }
  0x35   :  { %p2314_p8 = por %p2313_p7, %p2312_p6 }
  0x37   :  { %p2315_p9 = pnand %p2314_p8, %p2308_p5 }
  0x39   :  { %2318 = shalt.err (!%p2315_p9)
}
  0x3a   :  { %94 = dma.hbm_to_vmem [thread:$0]  %s3295_s5, 16, %s92_s17, [#allocation12]  }
  0x3b   :  { %s2319_s22 = scalar_lea.hbm %s3297_s7, 1024 }
  0x3c   :  { %p2320_p10 = scmp.ne.s32.totalorder %s3297_s7, %s2319_s22  ;;  %p2323_p11 = scmp.lt.u32.totalorder %s2319_s22, %s3297_s7 }
  0x3e   :  { %p2325_p12 = pnand %p2323_p11, %p2320_p10 }
  0x40   :  { %2328 = shalt.err (!%p2325_p12)
}
  0x41   :  { %s2329_s27 = scalar_lea.vmem %s2761_s20, 1024  ;;  %p2334_p0 = scmp.lt.s32.totalorder %s2761_s20, %s2761_s20 }
  0x42   :  { %p2330_p13 = scmp.ne.s32.totalorder %s2761_s20, %s2329_s27  ;;  %p2335_p1 = scmp.lt.s32.totalorder %s2329_s27, %s2329_s27 }
  0x44   :  { %p2336_p2 = por %p2335_p1, %p2334_p0 }
  0x46   :  { %p2337_p3 = pnand %p2336_p2, %p2330_p13 }
  0x48   :  { %2340 = shalt.err (!%p2337_p3)
}
  0x49   :  { %116 = dma.hbm_to_vmem [thread:$0]  %s3297_s7, 1024, %s2761_s20, [#allocation15], %s2625_s30, %s2625_s30, %s2626_s16  }
  0x4a   :  { %s2629_s28 = smov [#allocation17]   ;;  %s2630_s21 = smov [#allocation20]  }
  0x4b   :  { %s132_s3 = sshll.u32 %s2629_s28, 4  ;;  %s154_s1 = sshll.u32 %s2630_s21, 4  ;;  %s133_s3 = int_to_ptr.vmem [resolvable:$true] %s132_s3  ;;  %s2795_s1 = int_to_ptr.vmem [resolvable:$true] %s154_s1 }
  0x4c   :  { %s2341_s18 = scalar_lea.hbm %s3299_s9, 1024 }
  0x4d   :  { %p2342_p4 = scmp.ne.s32.totalorder %s3299_s9, %s2341_s18  ;;  %p2345_p5 = scmp.lt.u32.totalorder %s2341_s18, %s3299_s9 }
  0x4f   :  { %p2347_p6 = pnand %p2345_p5, %p2342_p4 }
  0x51   :  { %2350 = shalt.err (!%p2347_p6)
}
  0x52   :  { %s2351_s7 = scalar_lea.vmem %s133_s3, 1024  ;;  %p2356_p8 = scmp.lt.s32.totalorder %s133_s3, %s133_s3 }
  0x53   :  { %p2352_p7 = scmp.ne.s32.totalorder %s133_s3, %s2351_s7  ;;  %p2357_p9 = scmp.lt.s32.totalorder %s2351_s7, %s2351_s7 }
  0x55   :  { %p2358_p10 = por %p2357_p9, %p2356_p8 }
  0x57   :  { %p2359_p11 = pnand %p2358_p10, %p2352_p7 }
  0x59   :  { %2362 = shalt.err (!%p2359_p11)
}
  0x5a   :  { %138 = dma.hbm_to_vmem [thread:$0]  %s3299_s9, 1024, %s133_s3, [#allocation18], %s2625_s30, %s2625_s30, %s2626_s16  }
  0x5b   :  { %s2363_s17 = scalar_lea.hbm %s3301_s11, 1024 }
  0x5c   :  { %p2364_p12 = scmp.ne.s32.totalorder %s3301_s11, %s2363_s17  ;;  %p2367_p13 = scmp.lt.u32.totalorder %s2363_s17, %s3301_s11 }
  0x5e   :  { %p2369_p0 = pnand %p2367_p13, %p2364_p12 }
  0x60   :  { %2372 = shalt.err (!%p2369_p0)
}
  0x61   :  { %s2373_s18 = scalar_lea.vmem %s2795_s1, 1024  ;;  %p2378_p2 = scmp.lt.s32.totalorder %s2795_s1, %s2795_s1 }
  0x62   :  { %p2374_p1 = scmp.ne.s32.totalorder %s2795_s1, %s2373_s18  ;;  %p2379_p3 = scmp.lt.s32.totalorder %s2373_s18, %s2373_s18 }
  0x64   :  { %p2380_p4 = por %p2379_p3, %p2378_p2 }
  0x66   :  { %p2381_p5 = pnand %p2380_p4, %p2374_p1 }
  0x68   :  { %2384 = shalt.err (!%p2381_p5)
}
  0x69   :  { %160 = dma.hbm_to_vmem [thread:$0]  %s3301_s11, 1024, %s2795_s1, [#allocation21], %s2625_s30, %s2625_s30, %s2626_s16  }
  0x6a   :  { %s2631_s22 = smov [#allocation23]   ;;  %s2632_s24 = smov [#allocation2]  }
  0x6b   :  { %s176_s23 = sshll.u32 %s2631_s22, 4  ;;  %s34_s25 = sshll.u32 %s2632_s24, 4  ;;  %s177_s23 = int_to_ptr.vmem [resolvable:$true] %s176_s23  ;;  %s2832_s25 = int_to_ptr.vmem [resolvable:$true] %s34_s25 }
  0x6c   :  { %s2385_s26 = scalar_lea.hbm %s3303_s13, 1024 }
  0x6d   :  { %p2386_p6 = scmp.ne.s32.totalorder %s3303_s13, %s2385_s26  ;;  %p2389_p7 = scmp.lt.u32.totalorder %s2385_s26, %s3303_s13 }
  0x6f   :  { %p2391_p8 = pnand %p2389_p7, %p2386_p6 }
  0x71   :  { %2394 = shalt.err (!%p2391_p8)
}
  0x72   :  { %s2395_s11 = scalar_lea.vmem %s177_s23, 1024  ;;  %p2400_p10 = scmp.lt.s32.totalorder %s177_s23, %s177_s23 }
  0x73   :  { %p2396_p9 = scmp.ne.s32.totalorder %s177_s23, %s2395_s11  ;;  %p2401_p11 = scmp.lt.s32.totalorder %s2395_s11, %s2395_s11 }
  0x75   :  { %p2402_p12 = por %p2401_p11, %p2400_p10 }
  0x77   :  { %p2403_p13 = pnand %p2402_p12, %p2396_p9 }
  0x79   :  { %2406 = shalt.err (!%p2403_p13)
}
  0x7a   :  { %182 = dma.hbm_to_vmem [thread:$0]  %s3303_s13, 1024, %s177_s23, [#allocation24], %s2625_s30, %s2625_s30, %s2626_s16  }
  0x7b   :  { %s2407_s18 = scalar_lea.hbm %s3290_s0, 1024 }
  0x7c   :  { %p2408_p0 = scmp.ne.s32.totalorder %s3290_s0, %s2407_s18  ;;  %p2411_p1 = scmp.lt.u32.totalorder %s2407_s18, %s3290_s0 }
  0x7e   :  { %p2413_p2 = pnand %p2411_p1, %p2408_p0 }
  0x80   :  { %2416 = shalt.err (!%p2413_p2)
}
  0x81   :  { %s2417_s7 = scalar_lea.vmem %s2832_s25, 1024  ;;  %p2422_p4 = scmp.lt.s32.totalorder %s2832_s25, %s2832_s25 }
  0x82   :  { %p2418_p3 = scmp.ne.s32.totalorder %s2832_s25, %s2417_s7  ;;  %p2423_p5 = scmp.lt.s32.totalorder %s2417_s7, %s2417_s7 }
  0x84   :  { %p2424_p6 = por %p2423_p5, %p2422_p4 }
  0x86   :  { %p2425_p7 = pnand %p2424_p6, %p2418_p3 }
  0x88   :  { %2428 = shalt.err (!%p2425_p7)
}
  0x89   :  { %40 = dma.hbm_to_vmem [thread:$0]  %s3290_s0, 1024, %s2832_s25, [#allocation3], %s2625_s30, %s2625_s30, %s2626_s16  }
  0x8a   :  { %s2633_s20 = smov [#allocation7]   ;;  %s2634_s27 = smov [#allocation10]  }
  0x8b   :  { %s59_s26 = sshll.u32 %s2633_s20, 4  ;;  %s81_s5 = sshll.u32 %s2634_s27, 4  ;;  %s60_s26 = int_to_ptr.vmem [resolvable:$true] %s59_s26  ;;  %s82_s5 = int_to_ptr.vmem [resolvable:$true] %s81_s5 }
  0x8c   :  { %s2429_s11 = scalar_lea.hbm %s3292_s2, 128 }
  0x8d   :  { %p2430_p8 = scmp.ne.s32.totalorder %s3292_s2, %s2429_s11  ;;  %p2433_p9 = scmp.lt.u32.totalorder %s2429_s11, %s3292_s2 }
  0x8f   :  { %p2435_p10 = pnand %p2433_p9, %p2430_p8 }
  0x91   :  { %2438 = shalt.err (!%p2435_p10)
}
  0x92   :  { %s2439_s0 = scalar_lea.vmem %s60_s26, 128  ;;  %p2444_p12 = scmp.lt.s32.totalorder %s60_s26, %s60_s26 }
  0x93   :  { %p2440_p11 = scmp.ne.s32.totalorder %s60_s26, %s2439_s0  ;;  %p2445_p13 = scmp.lt.s32.totalorder %s2439_s0, %s2439_s0 }
  0x95   :  { %p2446_p0 = por %p2445_p13, %p2444_p12 }
  0x97   :  { %p2447_p1 = pnand %p2446_p0, %p2440_p11 }
  0x99   :  { %2450 = shalt.err (!%p2447_p1)
}
  0x9a   :  { %62 = dma.hbm_to_vmem [thread:$0]  %s3292_s2, 128, %s60_s26, [#allocation6]  }
  0x9b   :  { %s2451_s9 = scalar_lea.hbm %s3294_s4, 16 }
  0x9c   :  { %p2452_p2 = scmp.ne.s32.totalorder %s3294_s4, %s2451_s9  ;;  %p2455_p3 = scmp.lt.u32.totalorder %s2451_s9, %s3294_s4 }
  0x9e   :  { %p2457_p4 = pnand %p2455_p3, %p2452_p2 }
  0xa0   :  { %2460 = shalt.err (!%p2457_p4)
}
  0xa1   :  { %s2461_s13 = scalar_lea.vmem %s82_s5, 16  ;;  %s2465_s23 = scalar_lea.vmem %s82_s5, 32 }
  0xa2   :  { %p2462_p5 = scmp.ne.s32.totalorder %s82_s5, %s2461_s13  ;;  %p2466_p6 = scmp.lt.s32.totalorder %s82_s5, %s82_s5 }
  0xa3   :  { %p2467_p7 = scmp.lt.s32.totalorder %s2465_s23, %s2461_s13 }
  0xa5   :  { %p2468_p8 = por %p2467_p7, %p2466_p6 }
  0xa7   :  { %p2469_p9 = pnand %p2468_p8, %p2462_p5 }
  0xa9   :  { %2472 = shalt.err (!%p2469_p9)
}
  0xaa   :  { %84 = dma.hbm_to_vmem [thread:$0]  %s3294_s4, 16, %s82_s5, [#allocation9]  }
  0xab   :  { %s2635_s26 = smov [#allocation13]   ;;  %s2636_s17 = smov [#allocation16]  }
  0xac   :  { %s101_s27 = sshll.u32 %s2635_s26, 4  ;;  %s123_s28 = sshll.u32 %s2636_s17, 4  ;;  %s102_s27 = int_to_ptr.vmem [resolvable:$true] %s101_s27  ;;  %s124_s28 = int_to_ptr.vmem [resolvable:$true] %s123_s28 }
  0xad   :  { %s2473_s21 = scalar_lea.hbm %s3296_s6, 16 }
  0xae   :  { %p2474_p10 = scmp.ne.s32.totalorder %s3296_s6, %s2473_s21  ;;  %p2477_p11 = scmp.lt.u32.totalorder %s2473_s21, %s3296_s6 }
  0xb0   :  { %p2479_p12 = pnand %p2477_p11, %p2474_p10 }
  0xb2   :  { %2482 = shalt.err (!%p2479_p12)
}
  0xb3   :  { %s2483_s4 = scalar_lea.vmem %s102_s27, 16  ;;  %s2487_s5 = scalar_lea.vmem %s102_s27, 32 }
  0xb4   :  { %p2484_p13 = scmp.ne.s32.totalorder %s102_s27, %s2483_s4  ;;  %p2488_p0 = scmp.lt.s32.totalorder %s102_s27, %s102_s27 }
  0xb5   :  { %p2489_p1 = scmp.lt.s32.totalorder %s2487_s5, %s2483_s4 }
  0xb7   :  { %p2490_p2 = por %p2489_p1, %p2488_p0 }
  0xb9   :  { %p2491_p3 = pnand %p2490_p2, %p2484_p13 }
  0xbb   :  { %2494 = shalt.err (!%p2491_p3)
}
  0xbc   :  { %104 = dma.hbm_to_vmem [thread:$0]  %s3296_s6, 16, %s102_s27, [#allocation12]  }
  0xbd   :  { %s2495_s3 = scalar_lea.hbm %s3298_s8, 16 }
  0xbe   :  { %p2496_p4 = scmp.ne.s32.totalorder %s3298_s8, %s2495_s3  ;;  %p2499_p5 = scmp.lt.u32.totalorder %s2495_s3, %s3298_s8 }
  0xc0   :  { %p2501_p6 = pnand %p2499_p5, %p2496_p4 }
  0xc2   :  { %2504 = shalt.err (!%p2501_p6)
}
  0xc3   :  { %s2505_s23 = scalar_lea.vmem %s124_s28, 16  ;;  %s2509_s2 = scalar_lea.vmem %s124_s28, 32 }
  0xc4   :  { %p2506_p7 = scmp.ne.s32.totalorder %s124_s28, %s2505_s23  ;;  %p2510_p8 = scmp.lt.s32.totalorder %s124_s28, %s124_s28 }
  0xc5   :  { %p2511_p9 = scmp.lt.s32.totalorder %s2509_s2, %s2505_s23 }
  0xc7   :  { %p2512_p10 = por %p2511_p9, %p2510_p8 }
  0xc9   :  { %p2513_p11 = pnand %p2512_p10, %p2506_p7 }
  0xcb   :  { %2516 = shalt.err (!%p2513_p11)
}
  0xcc   :  { %126 = dma.hbm_to_vmem [thread:$0]  %s3298_s8, 16, %s124_s28, [#allocation15]  }
  0xcd   :  { %s2637_s26 = smov [#allocation19]   ;;  %s2638_s17 = smov [#allocation22]  }
  0xce   :  { %s145_s27 = sshll.u32 %s2637_s26, 4  ;;  %s167_s11 = sshll.u32 %s2638_s17, 4  ;;  %s146_s27 = int_to_ptr.vmem [resolvable:$true] %s145_s27  ;;  %s168_s11 = int_to_ptr.vmem [resolvable:$true] %s167_s11 }
  0xcf   :  { %s2517_s19 = scalar_lea.hbm %s3300_s10, 16 }
  0xd0   :  { %p2518_p12 = scmp.ne.s32.totalorder %s3300_s10, %s2517_s19  ;;  %p2521_p13 = scmp.lt.u32.totalorder %s2517_s19, %s3300_s10 }
  0xd2   :  { %p2523_p0 = pnand %p2521_p13, %p2518_p12 }
  0xd4   :  { %2526 = shalt.err (!%p2523_p0)
}
  0xd5   :  { %s2527_s8 = scalar_lea.vmem %s146_s27, 16  ;;  %s2531_s28 = scalar_lea.vmem %s146_s27, 32 }
  0xd6   :  { %p2528_p1 = scmp.ne.s32.totalorder %s146_s27, %s2527_s8  ;;  %p2532_p2 = scmp.lt.s32.totalorder %s146_s27, %s146_s27 }
  0xd7   :  { %p2533_p3 = scmp.lt.s32.totalorder %s2531_s28, %s2527_s8 }
  0xd9   :  { %p2534_p4 = por %p2533_p3, %p2532_p2 }
  0xdb   :  { %p2535_p5 = pnand %p2534_p4, %p2528_p1 }
  0xdd   :  { %2538 = shalt.err (!%p2535_p5)
}
  0xde   :  { %148 = dma.hbm_to_vmem [thread:$0]  %s3300_s10, 16, %s146_s27, [#allocation18]  }
  0xdf   :  { %s2539_s9 = scalar_lea.hbm %s3302_s12, 16 }
  0xe0   :  { %p2540_p6 = scmp.ne.s32.totalorder %s3302_s12, %s2539_s9  ;;  %p2543_p7 = scmp.lt.u32.totalorder %s2539_s9, %s3302_s12 }
  0xe2   :  { %p2545_p8 = pnand %p2543_p7, %p2540_p6 }
  0xe4   :  { %2548 = shalt.err (!%p2545_p8)
}
  0xe5   :  { %s2549_s13 = scalar_lea.vmem %s168_s11, 16  ;;  %s2553_s23 = scalar_lea.vmem %s168_s11, 32 }
  0xe6   :  { %p2550_p9 = scmp.ne.s32.totalorder %s168_s11, %s2549_s13  ;;  %p2554_p10 = scmp.lt.s32.totalorder %s168_s11, %s168_s11 }
  0xe7   :  { %p2555_p11 = scmp.lt.s32.totalorder %s2553_s23, %s2549_s13 }
  0xe9   :  { %p2556_p12 = por %p2555_p11, %p2554_p10 }
  0xeb   :  { %p2557_p13 = pnand %p2556_p12, %p2550_p9 }
  0xed   :  { %2560 = shalt.err (!%p2557_p13)
}
  0xee   :  { %170 = dma.hbm_to_vmem [thread:$0]  %s3302_s12, 16, %s168_s11, [#allocation21]  }
  0xef   :  { %s2639_s6 = smov [#allocation25]   ;;  %s2561_s17 = scalar_lea.hbm %s3304_s14, 16 }
  0xf0   :  { %s189_s20 = sshll.u32 %s2639_s6, 4  ;;  %p2562_p0 = scmp.ne.s32.totalorder %s3304_s14, %s2561_s17  ;;  %s190_s20 = int_to_ptr.vmem [resolvable:$true] %s189_s20 }
  0xf1   :  { %p2565_p1 = scmp.lt.u32.totalorder %s2561_s17, %s3304_s14 }
  0xf3   :  { %p2567_p2 = pnand %p2565_p1, %p2562_p0 }
  0xf5   :  { %2570 = shalt.err (!%p2567_p2)
}
  0xf6   :  { %s2571_s0 = scalar_lea.vmem %s190_s20, 16  ;;  %s2575_s12 = scalar_lea.vmem %s190_s20, 32 }
  0xf7   :  { %p2572_p3 = scmp.ne.s32.totalorder %s190_s20, %s2571_s0  ;;  %p2576_p4 = scmp.lt.s32.totalorder %s190_s20, %s190_s20 }
  0xf8   :  { %p2577_p5 = scmp.lt.s32.totalorder %s2575_s12, %s2571_s0 }
  0xfa   :  { %p2578_p6 = por %p2577_p5, %p2576_p4 }
  0xfc   :  { %p2579_p7 = pnand %p2578_p6, %p2572_p3 }
  0xfe   :  { %2582 = shalt.err (!%p2579_p7)
}
  0xff   :  { %192 = dma.hbm_to_vmem [thread:$0]  %s3304_s14, 16, %s190_s20, [#allocation24]  }
 0x100   :  { %2605 = dma.done.wait [#allocation3], 1024  }
 0x101   :  { %2606 = vsyncadd [#allocation3], 4294966272 }
 0x102   :  { %2607 = dma.done.wait [#allocation6], 1152  }
 0x103   :  { %2608 = vsyncadd [#allocation6], 4294966144 }
 0x104   :  { %2609 = dma.done.wait [#allocation9], 1040  }
 0x105   :  { %2610 = vsyncadd [#allocation9], 4294966256 }
 0x106   :  { %2611 = dma.done.wait [#allocation12], 32  }
 0x107   :  { %2612 = vsyncadd [#allocation12], 4294967264 }
 0x108   :  { %2613 = dma.done.wait [#allocation15], 1040  }
 0x109   :  { %2614 = vsyncadd [#allocation15], 4294966256 }
 0x10a   :  { %2615 = dma.done.wait [#allocation18], 1040  }
 0x10b   :  { %2616 = vsyncadd [#allocation18], 4294966256 }
 0x10c   :  { %2617 = dma.done.wait [#allocation21], 1040  }
 0x10d   :  { %2618 = vsyncadd [#allocation21], 4294966256 }
 0x10e   :  { %2619 = dma.done.wait [#allocation24], 1040  }
 0x10f   :  { %2620 = vsyncadd [#allocation24], 4294966256  ;;  %v2165_v0 = vld [vmem:[#allocation8] sm:$0xff]   ;;  %v2166_v1 = vld [vmem:[#allocation8 + $0x8] sm:$0xff]   ;;  %vm2641_vm1 = vmmov 0   ;;  %s2643_s14 = smov [#allocation26]  }
 0x110   :  { %1885 = vmatprep.subr.bf16.mxu0 %v2165_v0  ;;  %v2167_v2 = vld [vmem:[#allocation8 + $0x10] sm:$0xff]   ;;  %v2168_v3 = vld [vmem:[#allocation8 + $0x18] sm:$0xff]   ;;  %v2169_v5 = vld [vmem:[#allocation8 + $0x20] sm:$0xff]   ;;  %s1691_s4 = sshll.u32 %s2643_s14, 4  ;;  %s1692_s4 = int_to_ptr.vmem [resolvable:$true] %s1691_s4 }
 0x111   :  { %1886 = vmatpush3.bf16.msra.mxu0 %v2165_v0  ;;  %v2173_v4 = vld [vmem:[#allocation2] sm:$0xff]   ;;  %v2170_v6 = vld [vmem:[#allocation8 + $0x28] sm:$0xff]   ;;  %v2171_v7 = vld [vmem:[#allocation8 + $0x30] sm:$0xff]   ;;  %s2583_s8 = scalar_lea.vmem %s1692_s4, 128  ;;  %p2588_p9 = scmp.lt.s32.totalorder %s1692_s4, %s1692_s4 }
 0x112   :  { %1887 = vmatprep.subr.bf16.mxu0 %v2166_v1  ;;  %1901 = vmatprep.mubr.bf16.mxu0 %v2173_v4  ;;  %v2172_v8 = vld [vmem:[#allocation8 + $0x38] sm:$0xff]   ;;  %v2174_v9 = vld [vmem:[#allocation2 + $0x8] sm:$0xff]   ;;  %v2175_v10 = vld [vmem:[#allocation2 + $0x10] sm:$0xff]   ;;  %p2584_p8 = scmp.ne.s32.totalorder %s1692_s4, %s2583_s8  ;;  %p2589_p10 = scmp.lt.s32.totalorder %s2583_s8, %s2583_s8 }
 0x113   :  { %v2176_v11 = vld [vmem:[#allocation2 + $0x18] sm:$0xff]   ;;  %v2177_v12 = vld [vmem:[#allocation2 + $0x20] sm:$0xff]   ;;  %v2178_v13 = vld [vmem:[#allocation2 + $0x28] sm:$0xff]  }
 0x114   :  { %v2179_v14 = vld [vmem:[#allocation2 + $0x30] sm:$0xff]   ;;  %v2180_v15 = vld [vmem:[#allocation2 + $0x38] sm:$0xff]   ;;  %v1707_v16 = vld [vmem:[#allocation10] ss:$0 sm:$0xff]  ;;  %p2590_p11 = por %p2589_p10, %p2588_p9 }
 0x115   :  { %1888 = vmatpush3.bf16.msra.mxu0 %v2166_v1  ;;  %v2181_v1 = vld [vmem:[#allocation14] sm:$0xff]  }
 0x116   :  { %1889 = vmatprep.subr.bf16.mxu0 %v2167_v2  ;;  %1917 = vmatprep.subr.bf16.mxu1 %v2181_v1  ;;  %p2591_p12 = pnand %p2590_p11, %p2584_p8 }
 0x117   :  { %1918 = vmatpush3.bf16.msra.mxu1 %v2181_v1 }
 0x119   :  { %1890 = vmatpush3.bf16.msra.mxu0 %v2167_v2  ;;  %v489_v2 = vlaneseq }
 0x11a   :  { %1891 = vmatprep.subr.bf16.mxu0 %v2168_v3 }
 0x11d   :  { %1892 = vmatpush3.bf16.msra.mxu0 %v2168_v3  ;;  %v3033_v3 = vand.u32 127, %v489_v2 }
 0x11e   :  { %1893 = vmatprep.subr.bf16.mxu0 %v2169_v5 }
 0x11f   :  { %vm491_vm0 = vcmp.lt.s32.totalorder %v3033_v3, 48 }
 0x121   :  { %1894 = vmatpush3.bf16.msra.mxu0 %v2169_v5 }
 0x122   :  { %1895 = vmatprep.subr.bf16.mxu0 %v2170_v6 }
 0x125   :  { %1896 = vmatpush3.bf16.msra.mxu0 %v2170_v6 }
 0x126   :  { %1897 = vmatprep.subr.bf16.mxu0 %v2171_v7 }
 0x129   :  { %1898 = vmatpush3.bf16.msra.mxu0 %v2171_v7 }
 0x12a   :  { %1899 = vmatprep.subr.bf16.mxu0 %v2172_v8 }
 0x12d   :  { %1900 = vmatpush3.bf16.msra.mxu0 %v2172_v8 }
 0x130   :  { %1902 = vmatmul.mubr.bf16.vlgmr.msra.gmra.mrb[0].mxu0 %v2174_v9 }
 0x131   :  { %1905 = vmatprep.mubr.bf16.mxu0 %v2175_v10 }
 0x138   :  { %1906 = vmatmul.mubr.bf16.gmra.mrb[4].mxu0 %v2176_v11 }
 0x139   :  { %1909 = vmatprep.mubr.bf16.mxu0 %v2177_v12 }
 0x140   :  { %1910 = vmatmul.mubr.bf16.gmra.mrb[8].mxu0 %v2178_v13 }
 0x141   :  { %1913 = vmatprep.mubr.bf16.mxu0 %v2179_v14 }
 0x148   :  { %1914 = vmatmul.mubr.bf16.gmra.mrb[12].mxu0 %v2180_v15 }
 0x203   :  { %v1903_v17 = vpop.f32.mrb[0].mxu0 }
 0x204   :  { %v2953_v18 = vadd.f32 %v1903_v17, %v1707_v16  ;;  %v408_v19 = vpop.f32.mrb[1].mxu0 }
 0x205   :  { %v2955_v20 = vadd.f32 %v1707_v16, %v408_v19  ;;  %v1904_v21 = vpop.f32.mrb[2].mxu0 }
 0x206   :  { %v473_v22 = vmax.f32 %v2953_v18, 0.0  ;;  %v2958_v23 = vadd.f32 %v1904_v21, %v1707_v16  ;;  %v411_v24 = vpop.f32.mrb[3].mxu0 }
 0x207   :  { %v471_v25 = vmax.f32 %v2955_v20, 0.0  ;;  %v2961_v26 = vadd.f32 %v1707_v16, %v411_v24 }
 0x208   :  { %496 = vadd.xlane.f32.xlu1 %v473_v22  ;;  %v474_v27 = vmax.f32 %v2958_v23, 0.0 }
 0x209   :  { %492 = vadd.xlane.f32.xlu0 %v471_v25  ;;  %v472_v28 = vmax.f32 %v2961_v26, 0.0 }
 0x20b   :  { %v1907_v29 = vpop.f32.mrb[4].mxu0 }
 0x20c   :  { %498 = vadd.xlane.f32.xlu1 %v474_v27  ;;  %v424_v30 = vpop.f32.mrb[5].mxu0  ;;  %v2975_v34 = vadd.f32 %v1907_v29, %v1707_v16 }
 0x20d   :  { %v2971_v31 = vadd.f32 %v1707_v16, %v424_v30  ;;  %v1908_v32 = vpop.f32.mrb[6].mxu0  ;;  %494 = vadd.xlane.f32.xlu0 %v472_v28 }
 0x20e   :  { %v427_v33 = vpop.f32.mrb[7].mxu0  ;;  %v2980_v37 = vadd.f32 %v1908_v32, %v1707_v16  ;;  %v477_v39 = vmax.f32 %v2975_v34, 0.0 }
 0x20f   :  { %v475_v35 = vmax.f32 %v2971_v31, 0.0  ;;  %v2978_v36 = vadd.f32 %v1707_v16, %v427_v33 }
 0x210   :  { %v478_v42 = vmax.f32 %v2980_v37, 0.0 }
 0x211   :  { %v476_v38 = vmax.f32 %v2978_v36, 0.0  ;;  %500 = vadd.xlane.f32.xlu0 %v475_v35 }
 0x213   :  { %v1911_v40 = vpop.f32.mrb[8].mxu0  ;;  %502 = vadd.xlane.f32.xlu1 %v476_v38 }
 0x214   :  { %v440_v41 = vpop.f32.mrb[9].mxu0  ;;  %v2993_v46 = vadd.f32 %v1911_v40, %v1707_v16 }
 0x215   :  { %v2989_v43 = vadd.f32 %v1707_v16, %v440_v41  ;;  %v1912_v44 = vpop.f32.mrb[10].mxu0  ;;  %504 = vadd.xlane.f32.xlu0 %v477_v39 }
 0x216   :  { %v443_v45 = vpop.f32.mrb[11].mxu0  ;;  %v3000_v49 = vadd.f32 %v1912_v44, %v1707_v16  ;;  %v481_v51 = vmax.f32 %v2993_v46, 0.0 }
 0x217   :  { %v479_v47 = vmax.f32 %v2989_v43, 0.0  ;;  %v2996_v48 = vadd.f32 %v1707_v16, %v443_v45  ;;  %506 = vadd.xlane.f32.xlu1 %v478_v42 }
 0x218   :  { %v482_v54 = vmax.f32 %v3000_v49, 0.0 }
 0x219   :  { %v480_v50 = vmax.f32 %v2996_v48, 0.0  ;;  %508 = vadd.xlane.f32.xlu0 %v479_v47 }
 0x21b   :  { %v1915_v52 = vpop.f32.mrb[12].mxu0  ;;  %510 = vadd.xlane.f32.xlu1 %v480_v50 }
 0x21c   :  { %v456_v53 = vpop.f32.mrb[13].mxu0  ;;  %v3013_v58 = vadd.f32 %v1915_v52, %v1707_v16 }
 0x21d   :  { %v3009_v55 = vadd.f32 %v1707_v16, %v456_v53  ;;  %v1916_v56 = vpop.f32.mrb[14].mxu0  ;;  %512 = vadd.xlane.f32.xlu0 %v481_v51 }
 0x21e   :  { %v459_v57 = vpop.f32.mrb[15].mxu0  ;;  %v3020_v61 = vadd.f32 %v1916_v56, %v1707_v16  ;;  %v485_v63 = vmax.f32 %v3013_v58, 0.0 }
 0x21f   :  { %v483_v59 = vmax.f32 %v3009_v55, 0.0  ;;  %v3016_v60 = vadd.f32 %v1707_v16, %v459_v57  ;;  %514 = vadd.xlane.f32.xlu1 %v482_v54 }
 0x220   :  { %v486_v0 = vmax.f32 %v3020_v61, 0.0  ;;  %v2185_v61 = vld [vmem:[#allocation14 + $0x20] sm:$0xff]  }
 0x221   :  { %v484_v62 = vmax.f32 %v3016_v60, 0.0  ;;  %516 = vadd.xlane.f32.xlu0 %v483_v59 }
 0x223   :  { %518 = vadd.xlane.f32.xlu1 %v484_v62 }
 0x225   :  { %520 = vadd.xlane.f32.xlu0 %v485_v63 }
 0x227   :  { %522 = vadd.xlane.f32.xlu1 %v486_v0 }
 0x295   :  { %v497_v4 = vpop.xlane.xlu1 %496 }
 0x296   :  { %v526_v5 = vmul.f32 0.020833334, %v497_v4  ;;  %v493_v6 = vpop.xlane.xlu0 %492 }
 0x297   :  { %v524_v7 = vmul.f32 0.020833334, %v493_v6 }
 0x298   :  { %v542_v8 = vsub.f32 %v473_v22, %v526_v5 }
 0x299   :  { %v540_v9 = vsub.f32 %v471_v25, %v524_v7  ;;  %v499_v10 = vpop.xlane.xlu1 %498 }
 0x29a   :  { %v527_v11 = vmul.f32 0.020833334, %v499_v10  ;;  %v495_v12 = vpop.xlane.xlu0 %494  ;;  %v3052_v18 = vsel %vm491_vm0, %v542_v8, 0.0 }
 0x29b   :  { %v525_v13 = vmul.f32 0.020833334, %v495_v12  ;;  %v3042_v14 = vsel %vm491_vm0, %v540_v9, 0.0  ;;  %v576_v24 = vmul.f32 %v3052_v18, %v3052_v18 }
 0x29c   :  { %v574_v15 = vmul.f32 %v3042_v14, %v3042_v14  ;;  %v543_v16 = vsub.f32 %v474_v27, %v527_v11 }
 0x29d   :  { %v541_v17 = vsub.f32 %v472_v28, %v525_v13 }
 0x29e   :  { %590 = vadd.xlane.f32.xlu0 %v574_v15  ;;  %v501_v19 = vpop.xlane.xlu0 %500  ;;  %v3066_v27 = vsel %vm491_vm0, %v543_v16, 0.0  ;;  %v2183_v16 = vld [vmem:[#allocation14 + $0x10] sm:$0xff]  }
 0x29f   :  { %v528_v20 = vmul.f32 0.020833334, %v501_v19  ;;  %v3056_v21 = vsel %vm491_vm0, %v541_v17, 0.0  ;;  %v577_v31 = vmul.f32 %v3066_v27, %v3066_v27 }
 0x2a0   :  { %v503_v22 = vpop.xlane.xlu1 %502  ;;  %v575_v23 = vmul.f32 %v3056_v21, %v3056_v21 }
 0x2a1   :  { %v544_v25 = vsub.f32 %v475_v35, %v528_v20  ;;  %v529_v26 = vmul.f32 0.020833334, %v503_v22 }
 0x2a2   :  { %594 = vadd.xlane.f32.xlu0 %v576_v24  ;;  %592 = vadd.xlane.f32.xlu1 %v575_v23  ;;  %v505_v28 = vpop.xlane.xlu0 %504 }
 0x2a3   :  { %v545_v29 = vsub.f32 %v476_v38, %v529_v26  ;;  %v530_v30 = vmul.f32 0.020833334, %v505_v28  ;;  %v3072_v32 = vsel %vm491_vm0, %v544_v25, 0.0 }
 0x2a4   :  { %v507_v33 = vpop.xlane.xlu1 %506  ;;  %v578_v35 = vmul.f32 %v3072_v32, %v3072_v32 }
 0x2a5   :  { %v546_v40 = vsub.f32 %v477_v39, %v530_v30  ;;  %v531_v41 = vmul.f32 0.020833334, %v507_v33  ;;  %v3082_v36 = vsel %vm491_vm0, %v545_v29, 0.0  ;;  %v2186_v29 = vld [vmem:[#allocation14 + $0x28] sm:$0xff]   ;;  %v2187_v30 = vld [vmem:[#allocation14 + $0x30] sm:$0xff]   ;;  %v2188_v33 = vld [vmem:[#allocation14 + $0x38] sm:$0xff]  }
 0x2a6   :  { %596 = vadd.xlane.f32.xlu1 %v577_v31  ;;  %598 = vadd.xlane.f32.xlu0 %v578_v35  ;;  %v509_v38 = vpop.xlane.xlu0 %508  ;;  %v579_v34 = vmul.f32 %v3082_v36, %v3082_v36 }
 0x2a7   :  { %v547_v44 = vsub.f32 %v478_v42, %v531_v41  ;;  %v532_v45 = vmul.f32 0.020833334, %v509_v38  ;;  %v3088_v52 = vsel %vm491_vm0, %v546_v40, 0.0 }
 0x2a8   :  { %v511_v53 = vpop.xlane.xlu1 %510  ;;  %v580_v39 = vmul.f32 %v3088_v52, %v3088_v52 }
 0x2a9   :  { %v548_v56 = vsub.f32 %v479_v47, %v532_v45  ;;  %v533_v57 = vmul.f32 0.020833334, %v511_v53  ;;  %v3098_v37 = vsel %vm491_vm0, %v547_v44, 0.0 }
 0x2aa   :  { %600 = vadd.xlane.f32.xlu1 %v579_v34  ;;  %602 = vadd.xlane.f32.xlu0 %v580_v39  ;;  %v513_v42 = vpop.xlane.xlu0 %512  ;;  %v581_v43 = vmul.f32 %v3098_v37, %v3098_v37 }
 0x2ab   :  { %v549_v1 = vsub.f32 %v480_v50, %v533_v57  ;;  %v534_v2 = vmul.f32 0.020833334, %v513_v42  ;;  %v3104_v4 = vsel %vm491_vm0, %v548_v56, 0.0  ;;  %v2182_v50 = vld [vmem:[#allocation14 + $0x8] sm:$0xff]  }
 0x2ac   :  { %v515_v5 = vpop.xlane.xlu1 %514  ;;  %v582_v47 = vmul.f32 %v3104_v4, %v3104_v4  ;;  %1919 = vmatprep.subr.bf16.mxu1 %v2182_v50 }
 0x2ad   :  { %v550_v6 = vsub.f32 %v481_v51, %v534_v2  ;;  %v535_v7 = vmul.f32 0.020833334, %v515_v5  ;;  %v3114_v48 = vsel %vm491_vm0, %v549_v1, 0.0  ;;  %1920 = vmatpush3.bf16.msra.mxu1 %v2182_v50 }
 0x2ae   :  { %604 = vadd.xlane.f32.xlu1 %v581_v43  ;;  %606 = vadd.xlane.f32.xlu0 %v582_v47  ;;  %v517_v8 = vpop.xlane.xlu0 %516  ;;  %v583_v51 = vmul.f32 %v3114_v48, %v3114_v48 }
 0x2af   :  { %v551_v9 = vsub.f32 %v482_v54, %v535_v7  ;;  %v536_v10 = vmul.f32 0.020833334, %v517_v8  ;;  %v3120_v11 = vsel %vm491_vm0, %v550_v6, 0.0  ;;  %1921 = vmatprep.subr.bf16.mxu1 %v2183_v16 }
 0x2b0   :  { %v519_v46 = vpop.xlane.xlu1 %518  ;;  %v584_v12 = vmul.f32 %v3120_v11, %v3120_v11 }
 0x2b1   :  { %v552_v13 = vsub.f32 %v483_v59, %v536_v10  ;;  %v537_v15 = vmul.f32 0.020833334, %v519_v46  ;;  %v3130_v49 = vsel %vm491_vm0, %v551_v9, 0.0  ;;  %1922 = vmatpush3.bf16.msra.mxu1 %v2183_v16 }
 0x2b2   :  { %608 = vadd.xlane.f32.xlu1 %v583_v51  ;;  %610 = vadd.xlane.f32.xlu0 %v584_v12  ;;  %v521_v54 = vpop.xlane.xlu0 %520  ;;  %v585_v55 = vmul.f32 %v3130_v49, %v3130_v49  ;;  %v3165_v12 = vld [vmem:[#allocation11] ss:$0 sm:$0xff] }
 0x2b3   :  { %v553_v17 = vsub.f32 %v484_v62, %v537_v15  ;;  %v538_v19 = vmul.f32 0.020833334, %v521_v54  ;;  %v3136_v20 = vsel %vm491_vm0, %v552_v13, 0.0  ;;  %v2184_v62 = vld [vmem:[#allocation14 + $0x18] sm:$0xff]  }
 0x2b4   :  { %v523_v22 = vpop.xlane.xlu1 %522  ;;  %v586_v59 = vmul.f32 %v3136_v20, %v3136_v20  ;;  %1923 = vmatprep.subr.bf16.mxu1 %v2184_v62 }
 0x2b5   :  { %v554_v24 = vsub.f32 %v485_v63, %v538_v19  ;;  %v539_v23 = vmul.f32 0.020833334, %v523_v22  ;;  %v3146_v60 = vsel %vm491_vm0, %v553_v17, 0.0  ;;  %1924 = vmatpush3.bf16.msra.mxu1 %v2184_v62 }
 0x2b6   :  { %612 = vadd.xlane.f32.xlu1 %v585_v55  ;;  %614 = vadd.xlane.f32.xlu0 %v586_v59  ;;  %v587_v58 = vmul.f32 %v3146_v60, %v3146_v60 }
 0x2b7   :  { %v555_v25 = vsub.f32 %v486_v0, %v539_v23  ;;  %v3152_v26 = vsel %vm491_vm0, %v554_v24, 0.0  ;;  %1925 = vmatprep.subr.bf16.mxu1 %v2185_v61 }
 0x2b8   :  { %v588_v63 = vmul.f32 %v3152_v26, %v3152_v26 }
 0x2b9   :  { %v3160_v28 = vsel %vm491_vm0, %v555_v25, 0.0  ;;  %1926 = vmatpush3.bf16.msra.mxu1 %v2185_v61 }
 0x2ba   :  { %616 = vadd.xlane.f32.xlu1 %v587_v58  ;;  %618 = vadd.xlane.f32.xlu0 %v588_v63  ;;  %v589_v0 = vmul.f32 %v3160_v28, %v3160_v28 }
 0x2bb   :  { %1927 = vmatprep.subr.bf16.mxu1 %v2186_v29 }
 0x2bd   :  { %1928 = vmatpush3.bf16.msra.mxu1 %v2186_v29 }
 0x2be   :  { %620 = vadd.xlane.f32.xlu1 %v589_v0  ;;  %1929 = vmatprep.subr.bf16.mxu1 %v2187_v30 }
 0x2c1   :  { %1930 = vmatpush3.bf16.msra.mxu1 %v2187_v30 }
 0x2c2   :  { %1931 = vmatprep.subr.bf16.mxu1 %v2188_v33 }
 0x2c5   :  { %1932 = vmatpush3.bf16.msra.mxu1 %v2188_v33 }
 0x32b   :  { %v591_v3 = vpop.xlane.xlu0 %590 }
 0x32c   :  { %v622_v31 = vmul.f32 0.020833334, %v591_v3 }
 0x32e   :  { %v638_v35 = vadd.f32 1e-05, %v622_v31 }
 0x32f   :  { %v593_v40 = vpop.xlane.xlu1 %592  ;;  %v595_v41 = vpop.xlane.xlu0 %594 }
 0x330   :  { %2221 = vrsqrt.f32 %v638_v35  ;;  %v623_v38 = vmul.f32 0.020833334, %v593_v40  ;;  %v624_v44 = vmul.f32 0.020833334, %v595_v41 }
 0x332   :  { %v639_v45 = vadd.f32 1e-05, %v623_v38  ;;  %v640_v53 = vadd.f32 1e-05, %v624_v44 }
 0x333   :  { %v597_v34 = vpop.xlane.xlu1 %596  ;;  %v599_v39 = vpop.xlane.xlu0 %598 }
 0x334   :  { %2223 = vrsqrt.f32 %v639_v45  ;;  %v625_v56 = vmul.f32 0.020833334, %v597_v34  ;;  %v626_v57 = vmul.f32 0.020833334, %v599_v39 }
 0x335   :  { %2225 = vrsqrt.f32 %v640_v53 }
 0x336   :  { %v641_v42 = vadd.f32 1e-05, %v625_v56  ;;  %v642_v1 = vadd.f32 1e-05, %v626_v57 }
 0x337   :  { %v601_v2 = vpop.xlane.xlu1 %600  ;;  %v603_v5 = vpop.xlane.xlu0 %602 }
 0x338   :  { %2227 = vrsqrt.f32 %v641_v42  ;;  %v627_v43 = vmul.f32 0.020833334, %v601_v2  ;;  %v628_v47 = vmul.f32 0.020833334, %v603_v5 }
 0x339   :  { %2229 = vrsqrt.f32 %v642_v1 }
 0x33a   :  { %v2222_v6 = vpop.eup %2221  ;;  %v643_v7 = vadd.f32 1e-05, %v627_v43  ;;  %v644_v50 = vadd.f32 1e-05, %v628_v47 }
 0x33b   :  { %v605_v8 = vpop.xlane.xlu1 %604  ;;  %v607_v9 = vpop.xlane.xlu0 %606  ;;  %v670_v10 = vmul.f32 %v2222_v6, %v3042_v14  ;;  %v3169_v14 = vld [vmem:[#allocation13] ss:$0 sm:$0xff] }
 0x33c   :  { %2231 = vrsqrt.f32 %v643_v7  ;;  %v629_v46 = vmul.f32 0.020833334, %v605_v8  ;;  %v630_v51 = vmul.f32 0.020833334, %v607_v9 }
 0x33d   :  { %2233 = vrsqrt.f32 %v644_v50  ;;  %v692_v55 = vmul.f32 %v3165_v12, %v670_v10 }
 0x33e   :  { %v2224_v13 = vpop.eup %2223  ;;  %v645_v15 = vadd.f32 1e-05, %v629_v46  ;;  %v646_v54 = vadd.f32 1e-05, %v630_v51 }
 0x33f   :  { %v2226_v16 = vpop.eup %2225  ;;  %v609_v17 = vpop.xlane.xlu1 %608  ;;  %v671_v22 = vmul.f32 %v2224_v13, %v3056_v21  ;;  %v714_v21 = vadd.f32 %v3169_v14, %v692_v55 }
 0x340   :  { %v611_v19 = vpop.xlane.xlu0 %610  ;;  %2235 = vrsqrt.f32 %v645_v15  ;;  %v631_v59 = vmul.f32 0.020833334, %v609_v17  ;;  %v672_v23 = vmul.f32 %v2226_v16, %v3052_v18 }
 0x341   :  { %v632_v24 = vmul.f32 0.020833334, %v611_v19  ;;  %2237 = vrsqrt.f32 %v646_v54  ;;  %v693_v62 = vmul.f32 %v3165_v12, %v671_v22 }
 0x342   :  { %v2228_v25 = vpop.eup %2227  ;;  %v647_v58 = vadd.f32 1e-05, %v631_v59  ;;  %v694_v3 = vmul.f32 %v3165_v12, %v672_v23 }
 0x343   :  { %v648_v63 = vadd.f32 1e-05, %v632_v24  ;;  %v2230_v61 = vpop.eup %2229  ;;  %v613_v0 = vpop.xlane.xlu1 %612  ;;  %v715_v30 = vadd.f32 %v3169_v14, %v693_v62  ;;  %v673_v33 = vmul.f32 %v2228_v25, %v3066_v27 }
 0x344   :  { %v615_v29 = vpop.xlane.xlu0 %614  ;;  %2239 = vrsqrt.f32 %v647_v58  ;;  %v633_v31 = vmul.f32 0.020833334, %v613_v0  ;;  %v674_v41 = vmul.f32 %v2230_v61, %v3072_v32  ;;  %v716_v27 = vadd.f32 %v3169_v14, %v694_v3 }
 0x345   :  { %v634_v18 = vmul.f32 0.020833334, %v615_v29  ;;  %2241 = vrsqrt.f32 %v648_v63  ;;  %v746_v35 = vpack.c.bf16 %v715_v30, %v714_v21  ;;  %v695_v40 = vmul.f32 %v3165_v12, %v673_v33 }
 0x346   :  { %v2232_v38 = vpop.eup %2231  ;;  %v649_v44 = vadd.f32 1e-05, %v633_v31  ;;  %v696_v42 = vmul.f32 %v3165_v12, %v674_v41 }
 0x347   :  { %v650_v45 = vadd.f32 1e-05, %v634_v18  ;;  %v2234_v53 = vpop.eup %2233  ;;  %v617_v34 = vpop.xlane.xlu1 %616  ;;  %1933 = vmatprep.mubr.bf16.mxu1 %v746_v35  ;;  %v717_v56 = vadd.f32 %v3169_v14, %v695_v40  ;;  %v675_v57 = vmul.f32 %v2232_v38, %v3082_v36 }
 0x348   :  { %v619_v39 = vpop.xlane.xlu0 %618  ;;  %2243 = vrsqrt.f32 %v649_v44  ;;  %v635_v1 = vmul.f32 0.020833334, %v617_v34  ;;  %v676_v32 = vmul.f32 %v2234_v53, %v3088_v52  ;;  %v718_v9 = vadd.f32 %v3169_v14, %v696_v42 }
 0x349   :  { %v636_v2 = vmul.f32 0.020833334, %v619_v39  ;;  %2245 = vrsqrt.f32 %v650_v45  ;;  %v747_v5 = vpack.c.bf16 %v717_v56, %v716_v27  ;;  %v697_v43 = vmul.f32 %v3165_v12, %v675_v57  ;;  %v3216_v39 = vld [vmem:[#allocation5] sm:$0xff]   ;;  %v2197_v27 = vld [vmem:[#allocation17] sm:$0xff]   ;;  %v2198_v56 = vld [vmem:[#allocation17 + $0x8] sm:$0xff]  }
 0x34a   :  { %v2236_v47 = vpop.eup %2235  ;;  %v651_v6 = vadd.f32 1e-05, %v635_v1  ;;  %v698_v46 = vmul.f32 %v3165_v12, %v676_v32  ;;  %1965 = vmatprep.mubr.bf16.mxu0 %v3216_v39  ;;  %1981 = vmatprep.subr.bf16.mxu1 %v2197_v27  ;;  %v2201_v57 = vld [vmem:[#allocation17 + $0x20] sm:$0xff]  }
 0x34b   :  { %v652_v7 = vadd.f32 1e-05, %v636_v2  ;;  %v2238_v50 = vpop.eup %2237  ;;  %v621_v8 = vpop.xlane.xlu1 %620  ;;  %1934 = vmatmul.mubr.bf16.vlgmr.msra.gmra.mrb[0].mxu1 %v747_v5  ;;  %v719_v36 = vadd.f32 %v3169_v14, %v697_v43  ;;  %v677_v10 = vmul.f32 %v2236_v47, %v3098_v37 }
 0x34c   :  { %2247 = vrsqrt.f32 %v651_v6  ;;  %v637_v52 = vmul.f32 0.020833334, %v621_v8  ;;  %v678_v51 = vmul.f32 %v2238_v50, %v3104_v4  ;;  %v720_v19 = vadd.f32 %v3169_v14, %v698_v46  ;;  %1982 = vmatpush3.bf16.msra.mxu1 %v2197_v27 }
 0x34d   :  { %2249 = vrsqrt.f32 %v652_v7  ;;  %v748_v13 = vpack.c.bf16 %v719_v36, %v718_v9  ;;  %v699_v15 = vmul.f32 %v3165_v12, %v677_v10  ;;  %1983 = vmatprep.subr.bf16.mxu1 %v2198_v56 }
 0x34e   :  { %v2240_v54 = vpop.eup %2239  ;;  %v653_v16 = vadd.f32 1e-05, %v637_v52  ;;  %v700_v55 = vmul.f32 %v3165_v12, %v678_v51 }
 0x34f   :  { %v2242_v17 = vpop.eup %2241  ;;  %1937 = vmatprep.mubr.bf16.mxu1 %v748_v13  ;;  %v721_v22 = vadd.f32 %v3169_v14, %v699_v15  ;;  %v679_v37 = vmul.f32 %v2240_v54, %v3114_v48 }
 0x350   :  { %2251 = vrsqrt.f32 %v653_v16  ;;  %v680_v59 = vmul.f32 %v2242_v17, %v3120_v11  ;;  %v722_v25 = vadd.f32 %v3169_v14, %v700_v55  ;;  %1984 = vmatpush3.bf16.msra.mxu1 %v2198_v56  ;;  %v3221_v55 = vld [vmem:[#allocation5 + $0x10] sm:$0xff]  }
 0x351   :  { %v749_v4 = vpack.c.bf16 %v721_v22, %v720_v19  ;;  %v701_v24 = vmul.f32 %v3165_v12, %v679_v37  ;;  %v3219_v37 = vld [vmem:[#allocation5 + $0x8] sm:$0xff]  }
 0x352   :  { %v2244_v23 = vpop.eup %2243  ;;  %v702_v61 = vmul.f32 %v3165_v12, %v680_v59  ;;  %v3225_v59 = vld [vmem:[#allocation5 + $0x18] sm:$0xff]  }
 0x353   :  { %v2246_v62 = vpop.eup %2245  ;;  %1938 = vmatmul.mubr.bf16.gmra.mrb[4].mxu1 %v749_v4  ;;  %v723_v58 = vadd.f32 %v3169_v14, %v701_v24  ;;  %v681_v63 = vmul.f32 %v2244_v23, %v3130_v49  ;;  %v3227_v4 = vld [vmem:[#allocation5 + $0x20] sm:$0xff]   ;;  %v3231_v24 = vld [vmem:[#allocation5 + $0x28] sm:$0xff]   ;;  %v3233_v23 = vld [vmem:[#allocation5 + $0x30] sm:$0xff]  }
 0x354   :  { %v682_v48 = vmul.f32 %v2246_v62, %v3136_v20  ;;  %v724_v30 = vadd.f32 %v3169_v14, %v702_v61  ;;  %v3237_v62 = vld [vmem:[#allocation5 + $0x38] sm:$0xff]  }
 0x355   :  { %v750_v0 = vpack.c.bf16 %v723_v58, %v722_v25  ;;  %v703_v29 = vmul.f32 %v3165_v12, %v681_v63  ;;  %v2203_v25 = vld [vmem:[#allocation17 + $0x30] sm:$0xff]   ;;  %v2204_v58 = vld [vmem:[#allocation17 + $0x38] sm:$0xff]  }
 0x356   :  { %v2248_v11 = vpop.eup %2247  ;;  %v704_v31 = vmul.f32 %v3165_v12, %v682_v48  ;;  %v1734_v63 = vld [vmem:[#allocation16] ss:$0 sm:$0xff] }
 0x357   :  { %v2250_v21 = vpop.eup %2249  ;;  %1941 = vmatprep.mubr.bf16.mxu1 %v750_v0  ;;  %v725_v33 = vadd.f32 %v3169_v14, %v703_v29  ;;  %v683_v3 = vmul.f32 %v2248_v11, %v3146_v60 }
 0x358   :  { %v684_v49 = vmul.f32 %v2250_v21, %v3152_v26  ;;  %v726_v40 = vadd.f32 %v3169_v14, %v704_v31 }
 0x359   :  { %v751_v18 = vpack.c.bf16 %v725_v33, %v724_v30  ;;  %v705_v35 = vmul.f32 %v3165_v12, %v683_v3 }
 0x35a   :  { %v2252_v20 = vpop.eup %2251  ;;  %v706_v44 = vmul.f32 %v3165_v12, %v684_v49 }
 0x35b   :  { %1942 = vmatmul.mubr.bf16.gmra.mrb[8].mxu1 %v751_v18  ;;  %v727_v41 = vadd.f32 %v3169_v14, %v705_v35  ;;  %v685_v38 = vmul.f32 %v2252_v20, %v3160_v28  ;;  %v2199_v28 = vld [vmem:[#allocation17 + $0x10] sm:$0xff]  }
 0x35c   :  { %v728_v53 = vadd.f32 %v3169_v14, %v706_v44  ;;  %1985 = vmatprep.subr.bf16.mxu1 %v2199_v28 }
 0x35d   :  { %v752_v45 = vpack.c.bf16 %v727_v41, %v726_v40  ;;  %v707_v60 = vmul.f32 %v3165_v12, %v685_v38  ;;  %v2200_v12 = vld [vmem:[#allocation17 + $0x18] sm:$0xff]   ;;  %1986 = vmatpush3.bf16.msra.mxu1 %v2199_v28 }
 0x35e   :  { %1987 = vmatprep.subr.bf16.mxu1 %v2200_v12 }
 0x35f   :  { %1945 = vmatprep.mubr.bf16.mxu1 %v752_v45  ;;  %v729_v26 = vadd.f32 %v3169_v14, %v707_v60  ;;  %v2202_v14 = vld [vmem:[#allocation17 + $0x28] sm:$0xff]  }
 0x361   :  { %v753_v34 = vpack.c.bf16 %v729_v26, %v728_v53  ;;  %1988 = vmatpush3.bf16.msra.mxu1 %v2200_v12 }
 0x362   :  { %1989 = vmatprep.subr.bf16.mxu1 %v2201_v57 }
 0x363   :  { %1946 = vmatmul.mubr.bf16.gmra.mrb[12].mxu1 %v753_v34 }
 0x365   :  { %1990 = vmatpush3.bf16.msra.mxu1 %v2201_v57 }
 0x366   :  { %1991 = vmatprep.subr.bf16.mxu1 %v2202_v14 }
 0x369   :  { %1992 = vmatpush3.bf16.msra.mxu1 %v2202_v14 }
 0x36a   :  { %1993 = vmatprep.subr.bf16.mxu1 %v2203_v25 }
 0x36d   :  { %1994 = vmatpush3.bf16.msra.mxu1 %v2203_v25 }
 0x36e   :  { %1995 = vmatprep.subr.bf16.mxu1 %v2204_v58 }
 0x371   :  { %1996 = vmatpush3.bf16.msra.mxu1 %v2204_v58 }
 0x41e   :  { %v1935_v42 = vpop.f32.mrb[0].mxu1 }
 0x41f   :  { %v852_v1 = vpop.f32.mrb[1].mxu1 }
 0x420   :  { %v1936_v2 = vpop.f32.mrb[2].mxu1 }
 0x421   :  { %v916_v32 = vpack.c.bf16 %v1936_v2, %v1935_v42  ;;  %v855_v5 = vpop.f32.mrb[3].mxu1 }
 0x422   :  { %v915_v43 = vpack.c.bf16 %v855_v5, %v852_v1 }
 0x424   :  { %1949 = vmatprep.subr.bf16.mxu0 %v915_v43 }
 0x425   :  { %1950 = vmatpush3.bf16.msra.mxu0 %v915_v43 }
 0x426   :  { %v1939_v47 = vpop.f32.mrb[4].mxu1  ;;  %1951 = vmatprep.subr.bf16.mxu0 %v916_v32 }
 0x427   :  { %v868_v6 = vpop.f32.mrb[5].mxu1 }
 0x428   :  { %v1940_v7 = vpop.f32.mrb[6].mxu1 }
 0x429   :  { %v918_v50 = vpack.c.bf16 %v1940_v7, %v1939_v47  ;;  %v871_v8 = vpop.f32.mrb[7].mxu1  ;;  %1952 = vmatpush3.bf16.msra.mxu0 %v916_v32 }
 0x42a   :  { %v917_v9 = vpack.c.bf16 %v871_v8, %v868_v6 }
 0x42c   :  { %1953 = vmatprep.subr.bf16.mxu0 %v917_v9 }
 0x42d   :  { %1954 = vmatpush3.bf16.msra.mxu0 %v917_v9 }
 0x42e   :  { %v1943_v36 = vpop.f32.mrb[8].mxu1  ;;  %1955 = vmatprep.subr.bf16.mxu0 %v918_v50 }
 0x42f   :  { %v884_v10 = vpop.f32.mrb[9].mxu1 }
 0x430   :  { %v1944_v46 = vpop.f32.mrb[10].mxu1 }
 0x431   :  { %v920_v52 = vpack.c.bf16 %v1944_v46, %v1943_v36  ;;  %v887_v51 = vpop.f32.mrb[11].mxu1  ;;  %1956 = vmatpush3.bf16.msra.mxu0 %v918_v50 }
 0x432   :  { %v919_v13 = vpack.c.bf16 %v887_v51, %v884_v10 }
 0x434   :  { %1957 = vmatprep.subr.bf16.mxu0 %v919_v13 }
 0x435   :  { %1958 = vmatpush3.bf16.msra.mxu0 %v919_v13 }
 0x436   :  { %v1947_v15 = vpop.f32.mrb[12].mxu1  ;;  %1959 = vmatprep.subr.bf16.mxu0 %v920_v52 }
 0x437   :  { %v900_v54 = vpop.f32.mrb[13].mxu1 }
 0x438   :  { %v1948_v16 = vpop.f32.mrb[14].mxu1 }
 0x439   :  { %v922_v17 = vpack.c.bf16 %v1948_v16, %v1947_v15  ;;  %v903_v19 = vpop.f32.mrb[15].mxu1  ;;  %1960 = vmatpush3.bf16.msra.mxu0 %v920_v52 }
 0x43a   :  { %v921_v22 = vpack.c.bf16 %v903_v19, %v900_v54 }
 0x43c   :  { %1961 = vmatprep.subr.bf16.mxu0 %v921_v22 }
 0x43d   :  { %1962 = vmatpush3.bf16.msra.mxu0 %v921_v22 }
 0x43e   :  { %1963 = vmatprep.subr.bf16.mxu0 %v922_v17 }
 0x441   :  { %1964 = vmatpush3.bf16.msra.mxu0 %v922_v17 }
 0x444   :  { %1966 = vmatmul.mubr.bf16.vlgmr.msra.gmra.mrb[16].mxu0 %v3219_v37 }
 0x445   :  { %1969 = vmatprep.mubr.bf16.mxu0 %v3221_v55 }
 0x44c   :  { %1970 = vmatmul.mubr.bf16.gmra.mrb[20].mxu0 %v3225_v59 }
 0x44d   :  { %1973 = vmatprep.mubr.bf16.mxu0 %v3227_v4 }
 0x454   :  { %1974 = vmatmul.mubr.bf16.gmra.mrb[24].mxu0 %v3231_v24 }
 0x455   :  { %1977 = vmatprep.mubr.bf16.mxu0 %v3233_v23 }
 0x45c   :  { %1978 = vmatmul.mubr.bf16.gmra.mrb[28].mxu0 %v3237_v62 }
 0x45d   :  { %2029 = vmatprep.mubr.bf16.mxu0 %v3216_v39 }
 0x517   :  { %v1967_v61 = vpop.f32.mrb[16].mxu0 }
 0x518   :  { %v1021_v48 = vadd.f32 %v1967_v61, %v1734_v63  ;;  %v1012_v0 = vpop.f32.mrb[17].mxu0 }
 0x519   :  { %v1013_v29 = vadd.f32 %v1734_v63, %v1012_v0  ;;  %v1968_v11 = vpop.f32.mrb[18].mxu0 }
 0x51a   :  { %v1024_v21 = vadd.f32 %v1968_v11, %v1734_v63  ;;  %v1015_v30 = vpop.f32.mrb[19].mxu0  ;;  %v1077_v3 = vmax.f32 %v1021_v48, 0.0 }
 0x51b   :  { %v1016_v33 = vadd.f32 %v1734_v63, %v1015_v30  ;;  %v1075_v49 = vmax.f32 %v1013_v29, 0.0 }
 0x51c   :  { %v1078_v31 = vmax.f32 %v1024_v21, 0.0 }
 0x51d   :  { %v1076_v18 = vmax.f32 %v1016_v33, 0.0 }
 0x51e   :  { %v1092_v35 = vpack.c.bf16 %v1078_v31, %v1077_v3 }
 0x51f   :  { %v1091_v20 = vpack.c.bf16 %v1076_v18, %v1075_v49  ;;  %v1971_v40 = vpop.f32.mrb[20].mxu0 }
 0x520   :  { %v1037_v41 = vadd.f32 %v1971_v40, %v1734_v63  ;;  %v1028_v38 = vpop.f32.mrb[21].mxu0 }
 0x521   :  { %v1029_v44 = vadd.f32 %v1734_v63, %v1028_v38  ;;  %v1972_v45 = vpop.f32.mrb[22].mxu0  ;;  %1997 = vmatprep.mubr.bf16.mxu1 %v1091_v20 }
 0x522   :  { %v1040_v60 = vadd.f32 %v1972_v45, %v1734_v63  ;;  %v1031_v53 = vpop.f32.mrb[23].mxu0  ;;  %1998 = vmatmul.mubr.bf16.vlgmr.msra.gmra.mrb[16].mxu1 %v1092_v35  ;;  %v1081_v34 = vmax.f32 %v1037_v41, 0.0 }
 0x523   :  { %v1032_v26 = vadd.f32 %v1734_v63, %v1031_v53  ;;  %v1079_v27 = vmax.f32 %v1029_v44, 0.0 }
 0x524   :  { %v1082_v39 = vmax.f32 %v1040_v60, 0.0 }
 0x525   :  { %v1080_v56 = vmax.f32 %v1032_v26, 0.0 }
 0x526   :  { %v1094_v28 = vpack.c.bf16 %v1082_v39, %v1081_v34  ;;  %v2640_v39 = vmov 0.0|0.0  }
 0x527   :  { %v1093_v12 = vpack.c.bf16 %v1080_v56, %v1079_v27  ;;  %v1975_v57 = vpop.f32.mrb[24].mxu0  ;;  %2120 = vmatprep.subr.bf16.mxu1 %v2640_v39  ;;  %v2642_v27 = vmov 0.0   ;;  %v1751_v56 = vld [vmem:[#allocation19] ss:$0 sm:$0xff] }
 0x528   :  { %v1053_v14 = vadd.f32 %v1975_v57, %v1734_v63  ;;  %v1044_v42 = vpop.f32.mrb[25].mxu0 }
 0x529   :  { %v1045_v1 = vadd.f32 %v1734_v63, %v1044_v42  ;;  %v1976_v2 = vpop.f32.mrb[26].mxu0  ;;  %2001 = vmatprep.mubr.bf16.mxu1 %v1093_v12 }
 0x52a   :  { %v1056_v32 = vadd.f32 %v1976_v2, %v1734_v63  ;;  %v1047_v5 = vpop.f32.mrb[27].mxu0  ;;  %2002 = vmatmul.mubr.bf16.gmra.mrb[20].mxu1 %v1094_v28  ;;  %v1085_v47 = vmax.f32 %v1053_v14, 0.0 }
 0x52b   :  { %v1048_v43 = vadd.f32 %v1734_v63, %v1047_v5  ;;  %v1083_v7 = vmax.f32 %v1045_v1, 0.0 }
 0x52c   :  { %v1086_v6 = vmax.f32 %v1056_v32, 0.0 }
 0x52d   :  { %v1084_v50 = vmax.f32 %v1048_v43, 0.0 }
 0x52e   :  { %v1096_v8 = vpack.c.bf16 %v1086_v6, %v1085_v47 }
 0x52f   :  { %v1095_v9 = vpack.c.bf16 %v1084_v50, %v1083_v7  ;;  %v1979_v36 = vpop.f32.mrb[28].mxu0 }
 0x530   :  { %v1069_v10 = vadd.f32 %v1979_v36, %v1734_v63  ;;  %v1060_v46 = vpop.f32.mrb[29].mxu0 }
 0x531   :  { %v1061_v52 = vadd.f32 %v1734_v63, %v1060_v46  ;;  %v1980_v51 = vpop.f32.mrb[30].mxu0  ;;  %2005 = vmatprep.mubr.bf16.mxu1 %v1095_v9 }
 0x532   :  { %v1072_v13 = vadd.f32 %v1980_v51, %v1734_v63  ;;  %v1063_v15 = vpop.f32.mrb[31].mxu0  ;;  %2006 = vmatmul.mubr.bf16.gmra.mrb[24].mxu1 %v1096_v8  ;;  %v1089_v16 = vmax.f32 %v1069_v10, 0.0 }
 0x533   :  { %v1064_v54 = vadd.f32 %v1734_v63, %v1063_v15  ;;  %v1087_v19 = vmax.f32 %v1061_v52, 0.0 }
 0x534   :  { %v1090_v17 = vmax.f32 %v1072_v13, 0.0 }
 0x535   :  { %v1088_v22 = vmax.f32 %v1064_v54, 0.0 }
 0x536   :  { %v1098_v25 = vpack.c.bf16 %v1090_v17, %v1089_v16 }
 0x537   :  { %v1097_v58 = vpack.c.bf16 %v1088_v22, %v1087_v19 }
 0x539   :  { %2009 = vmatprep.mubr.bf16.mxu1 %v1097_v58 }
 0x53a   :  { %2010 = vmatmul.mubr.bf16.gmra.mrb[28].mxu1 %v1098_v25 }
 0x53b   :  { %2077 = vmatprep.mubr.msk.f32.mxu1 %vm2641_vm1, %v2642_v27 }
 0x5f5   :  { %v1999_v61 = vpop.f32.mrb[16].mxu1 }
 0x5f6   :  { %v1197_v48 = vpop.f32.mrb[17].mxu1 }
 0x5f7   :  { %v2000_v0 = vpop.f32.mrb[18].mxu1 }
 0x5f8   :  { %v1261_v29 = vpack.c.bf16 %v2000_v0, %v1999_v61  ;;  %v1200_v11 = vpop.f32.mrb[19].mxu1 }
 0x5f9   :  { %v1260_v21 = vpack.c.bf16 %v1200_v11, %v1197_v48 }
 0x5fb   :  { %2013 = vmatprep.subr.bf16.mxu0 %v1260_v21 }
 0x5fc   :  { %2014 = vmatpush3.bf16.msra.mxu0 %v1260_v21 }
 0x5fd   :  { %v2003_v30 = vpop.f32.mrb[20].mxu1  ;;  %2015 = vmatprep.subr.bf16.mxu0 %v1261_v29 }
 0x5fe   :  { %v1213_v33 = vpop.f32.mrb[21].mxu1 }
 0x5ff   :  { %v2004_v63 = vpop.f32.mrb[22].mxu1 }
 0x600   :  { %v1263_v3 = vpack.c.bf16 %v2004_v63, %v2003_v30  ;;  %v1216_v31 = vpop.f32.mrb[23].mxu1  ;;  %2016 = vmatpush3.bf16.msra.mxu0 %v1261_v29 }
 0x601   :  { %v1262_v49 = vpack.c.bf16 %v1216_v31, %v1213_v33 }
 0x603   :  { %2017 = vmatprep.subr.bf16.mxu0 %v1262_v49 }
 0x604   :  { %2018 = vmatpush3.bf16.msra.mxu0 %v1262_v49 }
 0x605   :  { %v2007_v18 = vpop.f32.mrb[24].mxu1  ;;  %2019 = vmatprep.subr.bf16.mxu0 %v1263_v3 }
 0x606   :  { %v1229_v35 = vpop.f32.mrb[25].mxu1 }
 0x607   :  { %v2008_v20 = vpop.f32.mrb[26].mxu1 }
 0x608   :  { %v1265_v40 = vpack.c.bf16 %v2008_v20, %v2007_v18  ;;  %v1232_v41 = vpop.f32.mrb[27].mxu1  ;;  %2020 = vmatpush3.bf16.msra.mxu0 %v1263_v3 }
 0x609   :  { %v1264_v38 = vpack.c.bf16 %v1232_v41, %v1229_v35 }
 0x60b   :  { %2021 = vmatprep.subr.bf16.mxu0 %v1264_v38 }
 0x60c   :  { %2022 = vmatpush3.bf16.msra.mxu0 %v1264_v38 }
 0x60d   :  { %v2011_v44 = vpop.f32.mrb[28].mxu1  ;;  %2023 = vmatprep.subr.bf16.mxu0 %v1265_v40 }
 0x60e   :  { %v1245_v45 = vpop.f32.mrb[29].mxu1 }
 0x60f   :  { %v2012_v60 = vpop.f32.mrb[30].mxu1 }
 0x610   :  { %v1267_v53 = vpack.c.bf16 %v2012_v60, %v2011_v44  ;;  %v1248_v26 = vpop.f32.mrb[31].mxu1  ;;  %2024 = vmatpush3.bf16.msra.mxu0 %v1265_v40 }
 0x611   :  { %v1266_v34 = vpack.c.bf16 %v1248_v26, %v1245_v45 }
 0x613   :  { %2025 = vmatprep.subr.bf16.mxu0 %v1266_v34 }
 0x614   :  { %2026 = vmatpush3.bf16.msra.mxu0 %v1266_v34 }
 0x615   :  { %2027 = vmatprep.subr.bf16.mxu0 %v1267_v53 }
 0x618   :  { %2028 = vmatpush3.bf16.msra.mxu0 %v1267_v53 }
 0x619   :  { %2080 = vmatprep.subr.bf16.mxu0 %v2642_v27 }
 0x61b   :  { %2030 = vmatmul.mubr.bf16.vlgmr.msra.gmra.mrb[32].mxu0 %v3219_v37  ;;  %v2205_v37 = vld [vmem:[#allocation20] sm:$0xff]  }
 0x61c   :  { %2033 = vmatprep.mubr.bf16.mxu0 %v3221_v55  ;;  %2081 = vmatpush3.bf16.msra.mxu0 %v2205_v37  ;;  %v2206_v55 = vld [vmem:[#allocation20 + $0x8] sm:$0xff]  }
 0x61d   :  { %2082 = vmatprep.subr.bf16.mxu0 %v2642_v27 }
 0x620   :  { %2083 = vmatpush3.bf16.msra.mxu0 %v2206_v55 }
 0x621   :  { %2084 = vmatprep.subr.bf16.mxu0 %v2642_v27 }
 0x623   :  { %2034 = vmatmul.mubr.bf16.gmra.mrb[36].mxu0 %v3225_v59  ;;  %v2207_v59 = vld [vmem:[#allocation20 + $0x10] sm:$0xff]  }
 0x624   :  { %2037 = vmatprep.mubr.bf16.mxu0 %v3227_v4  ;;  %2085 = vmatpush3.bf16.msra.mxu0 %v2207_v59  ;;  %v2208_v4 = vld [vmem:[#allocation20 + $0x18] sm:$0xff]   ;;  %v1388_v59 = vld [vmem:[#allocation7] sm:$0xff] }
 0x625   :  { %2086 = vmatprep.subr.bf16.mxu0 %v2642_v27 }
 0x628   :  { %2087 = vmatpush3.bf16.msra.mxu0 %v2208_v4  ;;  %v2212_v4 = vld [vmem:[#allocation20 + $0x38] sm:$0xff]  }
 0x629   :  { %2088 = vmatprep.subr.bf16.mxu0 %v2642_v27 }
 0x62b   :  { %2038 = vmatmul.mubr.bf16.gmra.mrb[40].mxu0 %v3231_v24  ;;  %v2209_v24 = vld [vmem:[#allocation20 + $0x20] sm:$0xff]  }
 0x62c   :  { %2041 = vmatprep.mubr.bf16.mxu0 %v3233_v23  ;;  %2089 = vmatpush3.bf16.msra.mxu0 %v2209_v24  ;;  %v2210_v23 = vld [vmem:[#allocation20 + $0x28] sm:$0xff]  }
 0x62d   :  { %2090 = vmatprep.subr.bf16.mxu0 %v2642_v27  ;;  %v2213_v24 = vld [vmem:[#allocation23] sm:$0xff]  }
 0x630   :  { %2091 = vmatpush3.bf16.msra.mxu0 %v2210_v23  ;;  %v2214_v23 = vld [vmem:[#allocation23 + $0x8] sm:$0xff]  }
 0x631   :  { %2092 = vmatprep.subr.bf16.mxu0 %v2642_v27 }
 0x633   :  { %2042 = vmatmul.mubr.bf16.gmra.mrb[44].mxu0 %v3237_v62  ;;  %v2211_v62 = vld [vmem:[#allocation20 + $0x30] sm:$0xff]  }
 0x634   :  { %2096 = vmatprep.mubr.msk.bf16.mxu0 %vm2641_vm1, %v2642_v27  ;;  %2093 = vmatpush3.bf16.msra.mxu0 %v2211_v62  ;;  %v2215_v62 = vld [vmem:[#allocation23 + $0x10] sm:$0xff]  }
 0x635   :  { %2094 = vmatprep.subr.bf16.mxu0 %v2642_v27 }
 0x638   :  { %2095 = vmatpush3.bf16.msra.mxu0 %v2212_v4 }
 0x6ee   :  { %v2031_v28 = vpop.f32.mrb[32].mxu0 }
 0x6ef   :  { %v1318_v12 = vadd.f32 %v2031_v28, %v1751_v56  ;;  %v1309_v57 = vpop.f32.mrb[33].mxu0  ;;  %v2218_v28 = vld [vmem:[#allocation23 + $0x28] sm:$0xff]  }
 0x6f0   :  { %v1310_v14 = vadd.f32 %v1751_v56, %v1309_v57  ;;  %v2032_v42 = vpop.f32.mrb[34].mxu0 }
 0x6f1   :  { %v1321_v1 = vadd.f32 %v2032_v42, %v1751_v56  ;;  %v1312_v2 = vpop.f32.mrb[35].mxu0  ;;  %v1374_v5 = vmax.f32 %v1318_v12, 0.0  ;;  %v2219_v42 = vld [vmem:[#allocation23 + $0x30] sm:$0xff]  }
 0x6f2   :  { %v1313_v32 = vadd.f32 %v1751_v56, %v1312_v2  ;;  %v1372_v47 = vmax.f32 %v1310_v14, 0.0  ;;  %v1752_v2 = vld [vmem:[#allocation22] ss:$0 sm:$0xff] }
 0x6f3   :  { %v1375_v43 = vmax.f32 %v1321_v1, 0.0  ;;  %v2220_v1 = vld [vmem:[#allocation23 + $0x38] sm:$0xff]  }
 0x6f4   :  { %v1373_v6 = vmax.f32 %v1313_v32, 0.0 }
 0x6f5   :  { %v2124_v7 = vpack.c.bf16 %v1375_v43, %v1374_v5 }
 0x6f6   :  { %v2121_v50 = vpack.c.bf16 %v1373_v6, %v1372_v47  ;;  %v2035_v8 = vpop.f32.mrb[36].mxu0 }
 0x6f7   :  { %v1334_v9 = vadd.f32 %v2035_v8, %v1751_v56  ;;  %v1325_v36 = vpop.f32.mrb[37].mxu0  ;;  %v1761_v8 = vld [vmem:[#allocation25] ss:$0 sm:$0xff] }
 0x6f8   :  { %v1326_v10 = vadd.f32 %v1751_v56, %v1325_v36  ;;  %v2036_v46 = vpop.f32.mrb[38].mxu0  ;;  %2122 = vmatpush3.bf16.msra.mxu1 %v2121_v50 }
 0x6f9   :  { %v1337_v52 = vadd.f32 %v2036_v46, %v1751_v56  ;;  %v1328_v51 = vpop.f32.mrb[39].mxu0  ;;  %2123 = vmatprep.subr.bf16.mxu1 %v2640_v39  ;;  %v1378_v15 = vmax.f32 %v1334_v9, 0.0 }
 0x6fa   :  { %v1329_v13 = vadd.f32 %v1751_v56, %v1328_v51  ;;  %v1376_v16 = vmax.f32 %v1326_v10, 0.0 }
 0x6fb   :  { %v1379_v54 = vmax.f32 %v1337_v52, 0.0 }
 0x6fc   :  { %v1377_v17 = vmax.f32 %v1329_v13, 0.0  ;;  %2125 = vmatpush3.bf16.msra.mxu1 %v2124_v7 }
 0x6fd   :  { %v2130_v19 = vpack.c.bf16 %v1379_v54, %v1378_v15  ;;  %2126 = vmatprep.subr.bf16.mxu1 %v2640_v39 }
 0x6fe   :  { %v2127_v22 = vpack.c.bf16 %v1377_v17, %v1376_v16  ;;  %v2039_v25 = vpop.f32.mrb[40].mxu0 }
 0x6ff   :  { %v1350_v58 = vadd.f32 %v2039_v25, %v1751_v56  ;;  %v1341_v61 = vpop.f32.mrb[41].mxu0 }
 0x700   :  { %v1342_v48 = vadd.f32 %v1751_v56, %v1341_v61  ;;  %v2040_v0 = vpop.f32.mrb[42].mxu0  ;;  %2128 = vmatpush3.bf16.msra.mxu1 %v2127_v22 }
 0x701   :  { %v1353_v29 = vadd.f32 %v2040_v0, %v1751_v56  ;;  %v1344_v11 = vpop.f32.mrb[43].mxu0  ;;  %2129 = vmatprep.subr.bf16.mxu1 %v2640_v39  ;;  %v1382_v30 = vmax.f32 %v1350_v58, 0.0 }
 0x702   :  { %v1345_v21 = vadd.f32 %v1751_v56, %v1344_v11  ;;  %v1380_v63 = vmax.f32 %v1342_v48, 0.0 }
 0x703   :  { %v1383_v33 = vmax.f32 %v1353_v29, 0.0 }
 0x704   :  { %v1381_v3 = vmax.f32 %v1345_v21, 0.0  ;;  %2131 = vmatpush3.bf16.msra.mxu1 %v2130_v19 }
 0x705   :  { %v2136_v31 = vpack.c.bf16 %v1383_v33, %v1382_v30  ;;  %2132 = vmatprep.subr.bf16.mxu1 %v2640_v39 }
 0x706   :  { %v2133_v49 = vpack.c.bf16 %v1381_v3, %v1380_v63  ;;  %v2043_v18 = vpop.f32.mrb[44].mxu0 }
 0x707   :  { %v1366_v35 = vadd.f32 %v2043_v18, %v1751_v56  ;;  %v1357_v20 = vpop.f32.mrb[45].mxu0 }
 0x708   :  { %v1358_v40 = vadd.f32 %v1751_v56, %v1357_v20  ;;  %v2044_v41 = vpop.f32.mrb[46].mxu0  ;;  %2134 = vmatpush3.bf16.msra.mxu1 %v2133_v49 }
 0x709   :  { %v1369_v38 = vadd.f32 %v2044_v41, %v1751_v56  ;;  %v1360_v44 = vpop.f32.mrb[47].mxu0  ;;  %2135 = vmatprep.subr.bf16.mxu1 %v2640_v39  ;;  %v1386_v60 = vmax.f32 %v1366_v35, 0.0 }
 0x70a   :  { %v1361_v45 = vadd.f32 %v1751_v56, %v1360_v44  ;;  %v1384_v26 = vmax.f32 %v1358_v40, 0.0  ;;  %v2217_v56 = vld [vmem:[#allocation23 + $0x20] sm:$0xff]  }
 0x70b   :  { %v1387_v53 = vmax.f32 %v1369_v38, 0.0 }
 0x70c   :  { %v1385_v34 = vmax.f32 %v1361_v45, 0.0  ;;  %2137 = vmatpush3.bf16.msra.mxu1 %v2136_v31 }
 0x70d   :  { %v2142_v37 = vpack.c.bf16 %v1387_v53, %v1386_v60  ;;  %2138 = vmatprep.subr.bf16.mxu1 %v2640_v39 }
 0x70e   :  { %v2139_v55 = vpack.c.bf16 %v1385_v34, %v1384_v26 }
 0x710   :  { %2140 = vmatpush3.bf16.msra.mxu1 %v2139_v55 }
 0x711   :  { %2141 = vmatprep.subr.bf16.mxu1 %v2640_v39  ;;  %v2216_v39 = vld [vmem:[#allocation23 + $0x18] sm:$0xff]  }
 0x714   :  { %2143 = vmatpush3.bf16.msra.mxu1 %v2142_v37 }
 0x715   :  { %2100 = vmatprep.subr.bf16.mxu1 %v2642_v27 }
 0x717   :  { %2078 = vmatmul.mubr.f32.vlgmr.msra.gmra.mrb[32].mxu1 %v1388_v59 }
 0x718   :  { %2116 = vmatprep.mubr.msk.bf16.mxu1 %vm2641_vm1, %v2642_v27  ;;  %2101 = vmatpush3.bf16.msra.mxu1 %v2213_v24 }
 0x719   :  { %2102 = vmatprep.subr.bf16.mxu1 %v2642_v27 }
 0x71c   :  { %2103 = vmatpush3.bf16.msra.mxu1 %v2214_v23 }
 0x71d   :  { %2104 = vmatprep.subr.bf16.mxu1 %v2642_v27 }
 0x720   :  { %2105 = vmatpush3.bf16.msra.mxu1 %v2215_v62 }
 0x721   :  { %2106 = vmatprep.subr.bf16.mxu1 %v2642_v27 }
 0x724   :  { %2107 = vmatpush3.bf16.msra.mxu1 %v2216_v39 }
 0x725   :  { %2108 = vmatprep.subr.bf16.mxu1 %v2642_v27 }
 0x728   :  { %2109 = vmatpush3.bf16.msra.mxu1 %v2217_v56 }
 0x729   :  { %2110 = vmatprep.subr.bf16.mxu1 %v2642_v27 }
 0x72c   :  { %2111 = vmatpush3.bf16.msra.mxu1 %v2218_v28 }
 0x72d   :  { %2112 = vmatprep.subr.bf16.mxu1 %v2642_v27 }
 0x730   :  { %2113 = vmatpush3.bf16.msra.mxu1 %v2219_v42 }
 0x731   :  { %2114 = vmatprep.subr.bf16.mxu1 %v2642_v27 }
 0x734   :  { %2115 = vmatpush3.bf16.msra.mxu1 %v2220_v1 }
 0x7ea   :  { %v1455_v12 = vpop.f32.mrb[32].mxu1 }
 0x7eb   :  { %v1459_v57 = vpack.c.bf16 %v1455_v12, %v1455_v12  ;;  %v2079_v14 = vpop.f32.mrb[33].mxu1 }
 0x7ed   :  { %2097 = vmatmul.mubr.bf16.vlgmr.msra.gmra.mrb[48].mxu0 %v1459_v57 }
 0x8c0   :  { %v1565_v32 = vpop.f32.mrb[48].mxu0 }
 0x8c1   :  { %v1566_v5 = vadd.f32 %v1752_v2, %v1565_v32  ;;  %v2098_v43 = vpop.f32.mrb[49].mxu0 }
 0x8c2   :  { %v1568_v47 = vpop.f32.mrb[50].mxu0 }
 0x8c3   :  { %v1571_v6 = vmax.f32 %v1566_v5, 0.0  ;;  %v2099_v7 = vpop.f32.mrb[51].mxu0 }
 0x8c5   :  { %v1572_v50 = vpack.c.bf16 %v1571_v6, %v1571_v6 }
 0x8c7   :  { %2117 = vmatmul.mubr.bf16.vlgmr.msra.gmra.mrb[36].mxu1 %v1572_v50 }
 0x99a   :  { %v1678_v9 = vpop.f32.mrb[36].mxu1 }
 0x99b   :  { %v1679_v36 = vadd.f32 %v1761_v8, %v1678_v9  ;;  %v2118_v10 = vpop.f32.mrb[37].mxu1 }
 0x99c   :  { %v1681_v46 = vpop.f32.mrb[38].mxu1 }
 0x99d   :  { %1684 = vst [vmem:[#allocation26] sm:$0xff] %v1679_v36  ;;  %v2119_v27 = vpop.f32.mrb[39].mxu1 }
 0x99e   :  { %2594 = shalt.err (!%p2591_p12)
}
 0x99f   :  { %s2595_s16 = scalar_lea.hbm %s3305_s15, 128 }
 0x9a0   :  { %p2596_p13 = scmp.ne.s32.totalorder %s3305_s15, %s2595_s16  ;;  %p2599_p0 = scmp.lt.u32.totalorder %s2595_s16, %s3305_s15 }
 0x9a2   :  { %p2601_p1 = pnand %p2599_p0, %p2596_p13 }
 0x9a4   :  { %2604 = shalt.err (!%p2601_p1)
}
 0x9a5   :  { %1694 = dma.vmem_to_hbm [thread:$0]  %s1692_s4, 128, %s3305_s15, [#allocation4]  }
 0x9a6   :  { %2621 = dma.done.wait [#allocation4], 128  }
 0x9a7   :  { %2622 = vsyncadd [#allocation4], 4294967168 }
 0x9a8   :  { %1698 = vsyncpa [#allocation3], 1 }
 0x9a9   :  { %1699 = vsyncpa [#allocation6], 1 }
 0x9aa   :  { %1700 = vsyncpa [#allocation9], 1 }
 0x9ab   :  { %1701 = vsyncpa [#allocation12], 1 }
 0x9ac   :  { %1702 = vsyncpa [#allocation15], 1 }
 0x9ad   :  { %1703 = vsyncpa [#allocation18], 1 }
 0x9ae   :  { %1704 = vsyncpa [#allocation21], 1 }
 0x9af   :  { %1705 = vsyncpa [#allocation24], 1 }
 0x9b0   :  { %1706 = vsyncpa [#allocation4], 1 }

</bundles_post_ra>
